<compile_context>
chip_gen: v6e
topology: v6e:2x2x1
jax: 0.10.0
libtpu: 0.0.40
codegen_flags: <defaults>
</compile_context>

<pallas_src>
import math
from functools import partial

import jax
import jax.numpy as jnp
from jax import lax
from jax.experimental import pallas as pl
from jax.experimental.pallas import tpu as pltpu


# ------------------------------ fused kernel --------------------------------

def _wave_block_kernel(x_ref, w0_ref, b0_ref, wfg_ref, bfg_ref, wc_ref, bc_ref,
                       out_ref, *, seq_len, num_rates, cout, matmul_dtype):
    """Fused Wave_Block forward for one batch sample, channel-major layout.

    x_ref   : (1, Cin, T)        input panel (channels on sublanes, time on lanes)
    w0_ref  : (C, Cin)           1x1 input conv weight (left operand), b0_ref: (C, 1)
    wfg_ref : (R, 3, 2C, C)      per-rate, per-tap [filter; gate] weights
    bfg_ref : (R, 2C, 1)         per-rate [filter; gate] bias
    wc_ref  : (R, C, C)          per-rate 1x1 conv weight,  bc_ref: (R, C, 1)
    out_ref : (1, C, T)          residual output panel
    """
    T = seq_len
    C = cout

    def mm(w, a):
        # Weights are pre-cast on the host; cast the activation operand once
        # per use.  Accumulation is always f32.
        return jnp.dot(w, a.astype(matmul_dtype),
                       preferred_element_type=jnp.float32)

    def sigmoid(z):
        # one EUP transcendental instead of exp + divide
        return 0.5 * (jnp.tanh(0.5 * z) + 1.0)

    x = x_ref[0]                                   # (Cin, T), f32
    x2 = mm(w0_ref[...], x) + b0_ref[...]          # (C, T), f32
    res = x2

    # time index along lanes (hoisted out of the rate loop)
    t_idx = lax.broadcasted_iota(jnp.int32, (C, T), 1)

    # static unrolled loop over dilation rates: x2 / res stay resident in VMEM.
    for i in range(num_rates):
        d = 2 ** i
        if d < T:
            # tap x[t-d]: lane roll by +d, zero where t < d
            xm = jnp.where(t_idx >= d, pltpu.roll(x2, shift=d, axis=1), 0.0)
            # tap x[t+d]: lane roll by T-d (== -d mod T), zero where t >= T-d
            xp = jnp.where(t_idx < T - d, pltpu.roll(x2, shift=T - d, axis=1), 0.0)
            # gated conv: three accumulating (2C,C)@(C,T) MXU matmuls
            fg = (mm(wfg_ref[i, 0], xm) + mm(wfg_ref[i, 1], x2)
                  + mm(wfg_ref[i, 2], xp) + bfg_ref[i])
        else:
            # degenerate rate: +/-d taps are identically zero -> center tap only
            fg = mm(wfg_ref[i, 1], x2) + bfg_ref[i]

        gated = jnp.tanh(fg[:C, :]) * sigmoid(fg[C:, :])    # f32 VPU/EUP

        # 1x1 conv + residual accumulate (stays in VMEM)
        x2 = mm(wc_ref[i], gated) + bc_ref[i]
        res = res + x2

    out_ref[0] = res.astype(out_ref.dtype)


# ------------------------------ host wrapper ---------------------------------

def wave_block_pallas(x_nct, params, *, matmul_dtype=jnp.float32):
    """Wave_Block forward. x_nct: (B, Cin, T) like the PyTorch module; returns (B, Cout, T)."""
    B, Cin, T = x_nct.shape
    Cout = params['w0'].shape[0]
    R = params['wfg'].shape[0]

    # pre-cast MXU operand weights on the host (no-op for the f32 path)
    w0 = params['w0'].astype(matmul_dtype)
    wfg = params['wfg'].astype(matmul_dtype)
    wc = params['wc'].astype(matmul_dtype)
    b0, bfg, bc = params['b0'], params['bfg'], params['bc']

    kernel = partial(_wave_block_kernel, seq_len=T, num_rates=R, cout=Cout,
                     matmul_dtype=matmul_dtype)

    flops = B * T * (2 * Cout * Cin
                     + R * (3 * 2 * (2 * Cout) * Cout + 2 * Cout * Cout))
    transcendentals = B * R * 2 * Cout * T
    bytes_accessed = int(x_nct.size) * 4 + B * Cout * T * 4 + sum(
        int(a.size) * a.dtype.itemsize for a in (w0, b0, wfg, bfg, wc, bc))
    cost = pl.CostEstimate(flops=flops, transcendentals=transcendentals,
                           bytes_accessed=bytes_accessed)

    out = pl.pallas_call(
        kernel,
        out_shape=jax.ShapeDtypeStruct((B, Cout, T), jnp.float32),
        grid=(B,),
        in_specs=[
            pl.BlockSpec((1, Cin, T), lambda b: (b, 0, 0)),          # x (NCT, native)
            pl.BlockSpec((Cout, Cin), lambda b: (0, 0)),             # w0
            pl.BlockSpec((Cout, 1), lambda b: (0, 0)),               # b0
            pl.BlockSpec((R, 3, 2 * Cout, Cout), lambda b: (0, 0, 0, 0)),  # wfg
            pl.BlockSpec((R, 2 * Cout, 1), lambda b: (0, 0, 0)),     # bfg
            pl.BlockSpec((R, Cout, Cout), lambda b: (0, 0, 0)),      # wc
            pl.BlockSpec((R, Cout, 1), lambda b: (0, 0, 0)),         # bc
        ],
        out_specs=pl.BlockSpec((1, Cout, T), lambda b: (b, 0, 0)),   # lane-dense output
        compiler_params=pltpu.CompilerParams(
            dimension_semantics=("parallel",),
            vmem_limit_bytes=32 * 1024 * 1024),
        cost_estimate=cost,
    )(x_nct, w0, b0, wfg, bfg, wc, bc)
    return out


# ----------------------------- parameter init --------------------------------

def init_wave_block_params(key, cin, cout, num_rates):
    """Returns (key, raw torch-style params, fused channel-major kernel params)."""
    def u(k, shape, fan_in):
        s = 1.0 / math.sqrt(fan_in)
        return jax.random.uniform(k, shape, jnp.float32, -s, s)

    key, k0, kb0 = jax.random.split(key, 3)
    w0 = u(k0, (cout, cin), cin)            # torch Conv1d weight[:, :, 0]  (O, I)
    b0 = u(kb0, (cout,), cin)

    filt_w, filt_b, gate_w, gate_b, conv_w, conv_b = [], [], [], [], [], []
    for _ in range(num_rates):
        key, kf, kfb, kg, kgb, kc, kcb = jax.random.split(key, 7)
        filt_w.append(u(kf, (cout, cout, 3), 3 * cout))   # torch (O, I, K)
        filt_b.append(u(kfb, (cout,), 3 * cout))
        gate_w.append(u(kg, (cout, cout, 3), 3 * cout))
        gate_b.append(u(kgb, (cout,), 3 * cout))
        conv_w.append(u(kc, (cout, cout), cout))          # torch (O, I) for k=1
        conv_b.append(u(kcb, (cout,), cout))

    raw = dict(w0=w0, b0=b0,
               filt_w=jnp.stack(filt_w), filt_b=jnp.stack(filt_b),
               gate_w=jnp.stack(gate_w), gate_b=jnp.stack(gate_b),
               conv_w=jnp.stack(conv_w), conv_b=jnp.stack(conv_b))

    # Fused channel-major layout: per rate and per tap k (k=0 -> t-d, 1 -> t,
    # 2 -> t+d) a (2C, C) left-operand matrix: rows 0:C = filter, C:2C = gate.
    wf = jnp.transpose(raw['filt_w'], (0, 3, 1, 2))       # (R, 3, O, I)
    wg = jnp.transpose(raw['gate_w'], (0, 3, 1, 2))
    wfg = jnp.concatenate([wf, wg], axis=2)               # (R, 3, 2C, C)
    bfg = jnp.concatenate([raw['filt_b'], raw['gate_b']], axis=-1)[:, :, None]  # (R, 2C, 1)

    fused = dict(w0=w0, b0=b0[:, None],
                 wfg=wfg, bfg=bfg,
                 wc=raw['conv_w'], bc=raw['conv_b'][:, :, None])
    return key, raw, fused


# --------------------------- pure-JAX reference -------------------------------

def wave_block_reference(x_nct, raw, num_rates):
    """Reference using lax.conv_general_dilated with torch Conv1d semantics."""
    def conv1d(x, w_oik, b, dilation, padding):
        y = lax.conv_general_dilated(
            x, w_oik, window_strides=(1,), padding=[(padding, padding)],
            rhs_dilation=(dilation,), dimension_numbers=('NCH', 'OIH', 'NCH'))
        return y + b[None, :, None]

    x = conv1d(x_nct, raw['w0'][:, :, None], raw['b0'], 1, 0)
    res = x
    for i in range(num_rates):
        d = 2 ** i
        f = conv1d(x, raw['filt_w'][i], raw['filt_b'][i], d, d)
        g = conv1d(x, raw['gate_w'][i], raw['gate_b'][i], d, d)
        x = jnp.tanh(f) * jax.nn.sigmoid(g)
        x = conv1d(x, raw['conv_w'][i][:, :, None], raw['conv_b'][i], 1, 0)
        res = res + x
    return res


# ----------------------------------- main -------------------------------------

if __name__ == "__main__":
    key = jax.random.PRNGKey(0)
    B, Cin, Cout, T, RATES = 2, 16, 32, 128, 4     # dilations 1, 2, 4, 8

    key, raw, fused = init_wave_block_params(key, Cin, Cout, RATES)
    key, kx = jax.random.split(key)
    x = jax.random.normal(kx, (B, Cin, T), jnp.float32)

    # f32 MXU-operand path (safe on all generations) + correctness check
    fwd = jax.jit(partial(wave_block_pallas, matmul_dtype=jnp.float32))
    out = jax.block_until_ready(fwd(x, fused))
    assert out.shape == (B, Cout, T) and out.dtype == jnp.float32

    ref = jax.block_until_ready(
        jax.jit(partial(wave_block_reference, num_rates=RATES))(x, raw))
    err = float(jnp.max(jnp.abs(out - ref)))
    assert err < 1e-4, f"f32 max abs error vs reference: {err}"

    # bf16 MXU-operand fast path (weights pre-cast, f32 accumulation + f32
    # gating math), validated against the f32 reference with a bf16 tolerance.
    fwd_bf16 = jax.jit(partial(wave_block_pallas, matmul_dtype=jnp.bfloat16))
    out_bf16 = jax.block_until_ready(fwd_bf16(x, fused))
    rel = float(jnp.max(jnp.abs(out_bf16 - ref)) / (jnp.max(jnp.abs(ref)) + 1e-6))
    assert rel < 5e-2, f"bf16 relative error vs reference: {rel}"

    print("KERNEL_OK")
</pallas_src>

<mosaic_0001>
module attributes {stable_mosaic.version = 11 : i64} {
  func.func @_wave_block_kernel(%arg0: i32, %arg1: memref<1x16x128xf32, #tpu.memory_space<vmem>>, %arg2: memref<32x16xf32, #tpu.memory_space<vmem>>, %arg3: memref<32x1xf32, #tpu.memory_space<vmem>>, %arg4: memref<4x3x64x32xf32, #tpu.memory_space<vmem>>, %arg5: memref<4x64x1xf32, #tpu.memory_space<vmem>>, %arg6: memref<4x32x32xf32, #tpu.memory_space<vmem>>, %arg7: memref<4x32x1xf32, #tpu.memory_space<vmem>>, %arg8: memref<1x32x128xf32, #tpu.memory_space<vmem>>) attributes {dimension_semantics = [#tpu.dimension_semantics<parallel>], iteration_bounds = array<i64: 2>, scalar_prefetch = 0 : i64, scratch_operands = 0 : i64, tpu.core_type = #tpu.core_type<tc>, window_params = [{transform_indices = @transform_0, window_bounds = array<i64: 1, 16, 128>}, {pipeline_mode = #tpu.pipeline_mode<synchronous>, transform_indices = @transform_1, window_bounds = array<i64: 32, 16>}, {pipeline_mode = #tpu.pipeline_mode<synchronous>, transform_indices = @transform_2, window_bounds = array<i64: 32, 1>}, {pipeline_mode = #tpu.pipeline_mode<synchronous>, transform_indices = @transform_3, window_bounds = array<i64: 4, 3, 64, 32>}, {pipeline_mode = #tpu.pipeline_mode<synchronous>, transform_indices = @transform_4, window_bounds = array<i64: 4, 64, 1>}, {pipeline_mode = #tpu.pipeline_mode<synchronous>, transform_indices = @transform_5, window_bounds = array<i64: 4, 32, 32>}, {pipeline_mode = #tpu.pipeline_mode<synchronous>, transform_indices = @transform_6, window_bounds = array<i64: 4, 32, 1>}, {transform_indices = @transform_7, window_bounds = array<i64: 1, 32, 128>}]} {
    %c0 = arith.constant 0 : index
    %c0_0 = arith.constant 0 : index
    %c0_1 = arith.constant 0 : index
    %0 = vector.load %arg1[%c0, %c0_0, %c0_1] : memref<1x16x128xf32, #tpu.memory_space<vmem>>, vector<1x16x128xf32>
    %1 = vector.shape_cast %0 : vector<1x16x128xf32> to vector<16x128xf32>
    %c0_2 = arith.constant 0 : index
    %c0_3 = arith.constant 0 : index
    %2 = vector.load %arg2[%c0_2, %c0_3] : memref<32x16xf32, #tpu.memory_space<vmem>>, vector<32x16xf32>
    %cst = arith.constant dense<0.000000e+00> : vector<32x128xf32>
    %3 = tpu.matmul %2, %1, %cst {dimension_numbers = #tpu.dot_dimension_numbers<[1], [0], [0], [1], [0, 0, 1, 1], [], []>} : vector<32x16xf32>, vector<16x128xf32>, vector<32x128xf32> -> vector<32x128xf32>
    %c0_4 = arith.constant 0 : index
    %c0_5 = arith.constant 0 : index
    %4 = vector.load %arg3[%c0_4, %c0_5] : memref<32x1xf32, #tpu.memory_space<vmem>>, vector<32x1xf32>
    %5 = vector.broadcast %4 : vector<32x1xf32> to vector<32x128xf32>
    %6 = arith.addf %3, %5 : vector<32x128xf32>
    %7 = tpu.iota {dimensions = array<i32: 1>} : vector<32x128xi32>
    %c1_i32 = arith.constant 1 : i32
    %8 = vector.broadcast %c1_i32 : i32 to vector<32x128xi32>
    %9 = arith.cmpi sge, %7, %8 : vector<32x128xi32>
    %c1_i32_6 = arith.constant 1 : i32
    %10 = tpu.dynamic_rotate %6 by %c1_i32_6 dim 1 : vector<32x128xf32>, i32 -> vector<32x128xf32>
    %cst_7 = arith.constant 0.000000e+00 : f32
    %11 = vector.broadcast %cst_7 : f32 to vector<32x128xf32>
    %12 = arith.select %9, %10, %11 : vector<32x128xi1>, vector<32x128xf32>
    %c127_i32 = arith.constant 127 : i32
    %13 = vector.broadcast %c127_i32 : i32 to vector<32x128xi32>
    %14 = arith.cmpi slt, %7, %13 : vector<32x128xi32>
    %c127_i32_8 = arith.constant 127 : i32
    %15 = tpu.dynamic_rotate %6 by %c127_i32_8 dim 1 : vector<32x128xf32>, i32 -> vector<32x128xf32>
    %cst_9 = arith.constant 0.000000e+00 : f32
    %16 = vector.broadcast %cst_9 : f32 to vector<32x128xf32>
    %17 = arith.select %14, %15, %16 : vector<32x128xi1>, vector<32x128xf32>
    %c0_10 = arith.constant 0 : index
    %c0_11 = arith.constant 0 : index
    %c0_12 = arith.constant 0 : index
    %c0_13 = arith.constant 0 : index
    %18 = vector.load %arg4[%c0_10, %c0_11, %c0_12, %c0_13] : memref<4x3x64x32xf32, #tpu.memory_space<vmem>>, vector<1x1x64x32xf32>
    %19 = vector.shape_cast %18 : vector<1x1x64x32xf32> to vector<64x32xf32>
    %cst_14 = arith.constant dense<0.000000e+00> : vector<64x128xf32>
    %20 = tpu.matmul %19, %12, %cst_14 {dimension_numbers = #tpu.dot_dimension_numbers<[1], [0], [0], [1], [0, 0, 1, 1], [], []>} : vector<64x32xf32>, vector<32x128xf32>, vector<64x128xf32> -> vector<64x128xf32>
    %c0_15 = arith.constant 0 : index
    %c1 = arith.constant 1 : index
    %c0_16 = arith.constant 0 : index
    %c0_17 = arith.constant 0 : index
    %21 = vector.load %arg4[%c0_15, %c1, %c0_16, %c0_17] : memref<4x3x64x32xf32, #tpu.memory_space<vmem>>, vector<1x1x64x32xf32>
    %22 = vector.shape_cast %21 : vector<1x1x64x32xf32> to vector<64x32xf32>
    %cst_18 = arith.constant dense<0.000000e+00> : vector<64x128xf32>
    %23 = tpu.matmul %22, %6, %cst_18 {dimension_numbers = #tpu.dot_dimension_numbers<[1], [0], [0], [1], [0, 0, 1, 1], [], []>} : vector<64x32xf32>, vector<32x128xf32>, vector<64x128xf32> -> vector<64x128xf32>
    %24 = arith.addf %20, %23 : vector<64x128xf32>
    %c0_19 = arith.constant 0 : index
    %c2 = arith.constant 2 : index
    %c0_20 = arith.constant 0 : index
    %c0_21 = arith.constant 0 : index
    %25 = vector.load %arg4[%c0_19, %c2, %c0_20, %c0_21] : memref<4x3x64x32xf32, #tpu.memory_space<vmem>>, vector<1x1x64x32xf32>
    %26 = vector.shape_cast %25 : vector<1x1x64x32xf32> to vector<64x32xf32>
    %cst_22 = arith.constant dense<0.000000e+00> : vector<64x128xf32>
    %27 = tpu.matmul %26, %17, %cst_22 {dimension_numbers = #tpu.dot_dimension_numbers<[1], [0], [0], [1], [0, 0, 1, 1], [], []>} : vector<64x32xf32>, vector<32x128xf32>, vector<64x128xf32> -> vector<64x128xf32>
    %28 = arith.addf %24, %27 : vector<64x128xf32>
    %c0_23 = arith.constant 0 : index
    %c0_24 = arith.constant 0 : index
    %c0_25 = arith.constant 0 : index
    %29 = vector.load %arg5[%c0_23, %c0_24, %c0_25] : memref<4x64x1xf32, #tpu.memory_space<vmem>>, vector<1x64x1xf32>
    %30 = vector.shape_cast %29 : vector<1x64x1xf32> to vector<64x1xf32>
    %31 = vector.broadcast %30 : vector<64x1xf32> to vector<64x128xf32>
    %32 = arith.addf %28, %31 : vector<64x128xf32>
    %33 = vector.extract_strided_slice %32 {offsets = [0, 0], sizes = [32, 128], strides = [1, 1]} : vector<64x128xf32> to vector<32x128xf32>
    %34 = math.tanh %33 : vector<32x128xf32>
    %35 = vector.extract_strided_slice %32 {offsets = [32, 0], sizes = [32, 128], strides = [1, 1]} : vector<64x128xf32> to vector<32x128xf32>
    %cst_26 = arith.constant 5.000000e-01 : f32
    %36 = vector.broadcast %cst_26 : f32 to vector<32x128xf32>
    %37 = arith.mulf %36, %35 : vector<32x128xf32>
    %38 = math.tanh %37 : vector<32x128xf32>
    %cst_27 = arith.constant 1.000000e+00 : f32
    %39 = vector.broadcast %cst_27 : f32 to vector<32x128xf32>
    %40 = arith.addf %38, %39 : vector<32x128xf32>
    %cst_28 = arith.constant 5.000000e-01 : f32
    %41 = vector.broadcast %cst_28 : f32 to vector<32x128xf32>
    %42 = arith.mulf %41, %40 : vector<32x128xf32>
    %43 = arith.mulf %34, %42 : vector<32x128xf32>
    %c0_29 = arith.constant 0 : index
    %c0_30 = arith.constant 0 : index
    %c0_31 = arith.constant 0 : index
    %44 = vector.load %arg6[%c0_29, %c0_30, %c0_31] : memref<4x32x32xf32, #tpu.memory_space<vmem>>, vector<1x32x32xf32>
    %45 = vector.shape_cast %44 : vector<1x32x32xf32> to vector<32x32xf32>
    %cst_32 = arith.constant dense<0.000000e+00> : vector<32x128xf32>
    %46 = tpu.matmul %45, %43, %cst_32 {dimension_numbers = #tpu.dot_dimension_numbers<[1], [0], [0], [1], [0, 0, 1, 1], [], []>} : vector<32x32xf32>, vector<32x128xf32>, vector<32x128xf32> -> vector<32x128xf32>
    %c0_33 = arith.constant 0 : index
    %c0_34 = arith.constant 0 : index
    %c0_35 = arith.constant 0 : index
    %47 = vector.load %arg7[%c0_33, %c0_34, %c0_35] : memref<4x32x1xf32, #tpu.memory_space<vmem>>, vector<1x32x1xf32>
    %48 = vector.shape_cast %47 : vector<1x32x1xf32> to vector<32x1xf32>
    %49 = vector.broadcast %48 : vector<32x1xf32> to vector<32x128xf32>
    %50 = arith.addf %46, %49 : vector<32x128xf32>
    %51 = arith.addf %6, %50 : vector<32x128xf32>
    %c2_i32 = arith.constant 2 : i32
    %52 = vector.broadcast %c2_i32 : i32 to vector<32x128xi32>
    %53 = arith.cmpi sge, %7, %52 : vector<32x128xi32>
    %c2_i32_36 = arith.constant 2 : i32
    %54 = tpu.dynamic_rotate %50 by %c2_i32_36 dim 1 : vector<32x128xf32>, i32 -> vector<32x128xf32>
    %cst_37 = arith.constant 0.000000e+00 : f32
    %55 = vector.broadcast %cst_37 : f32 to vector<32x128xf32>
    %56 = arith.select %53, %54, %55 : vector<32x128xi1>, vector<32x128xf32>
    %c126_i32 = arith.constant 126 : i32
    %57 = vector.broadcast %c126_i32 : i32 to vector<32x128xi32>
    %58 = arith.cmpi slt, %7, %57 : vector<32x128xi32>
    %c126_i32_38 = arith.constant 126 : i32
    %59 = tpu.dynamic_rotate %50 by %c126_i32_38 dim 1 : vector<32x128xf32>, i32 -> vector<32x128xf32>
    %cst_39 = arith.constant 0.000000e+00 : f32
    %60 = vector.broadcast %cst_39 : f32 to vector<32x128xf32>
    %61 = arith.select %58, %59, %60 : vector<32x128xi1>, vector<32x128xf32>
    %c1_40 = arith.constant 1 : index
    %c0_41 = arith.constant 0 : index
    %c0_42 = arith.constant 0 : index
    %c0_43 = arith.constant 0 : index
    %62 = vector.load %arg4[%c1_40, %c0_41, %c0_42, %c0_43] : memref<4x3x64x32xf32, #tpu.memory_space<vmem>>, vector<1x1x64x32xf32>
    %63 = vector.shape_cast %62 : vector<1x1x64x32xf32> to vector<64x32xf32>
    %cst_44 = arith.constant dense<0.000000e+00> : vector<64x128xf32>
    %64 = tpu.matmul %63, %56, %cst_44 {dimension_numbers = #tpu.dot_dimension_numbers<[1], [0], [0], [1], [0, 0, 1, 1], [], []>} : vector<64x32xf32>, vector<32x128xf32>, vector<64x128xf32> -> vector<64x128xf32>
    %c1_45 = arith.constant 1 : index
    %c1_46 = arith.constant 1 : index
    %c0_47 = arith.constant 0 : index
    %c0_48 = arith.constant 0 : index
    %65 = vector.load %arg4[%c1_45, %c1_46, %c0_47, %c0_48] : memref<4x3x64x32xf32, #tpu.memory_space<vmem>>, vector<1x1x64x32xf32>
    %66 = vector.shape_cast %65 : vector<1x1x64x32xf32> to vector<64x32xf32>
    %cst_49 = arith.constant dense<0.000000e+00> : vector<64x128xf32>
    %67 = tpu.matmul %66, %50, %cst_49 {dimension_numbers = #tpu.dot_dimension_numbers<[1], [0], [0], [1], [0, 0, 1, 1], [], []>} : vector<64x32xf32>, vector<32x128xf32>, vector<64x128xf32> -> vector<64x128xf32>
    %68 = arith.addf %64, %67 : vector<64x128xf32>
    %c1_50 = arith.constant 1 : index
    %c2_51 = arith.constant 2 : index
    %c0_52 = arith.constant 0 : index
    %c0_53 = arith.constant 0 : index
    %69 = vector.load %arg4[%c1_50, %c2_51, %c0_52, %c0_53] : memref<4x3x64x32xf32, #tpu.memory_space<vmem>>, vector<1x1x64x32xf32>
    %70 = vector.shape_cast %69 : vector<1x1x64x32xf32> to vector<64x32xf32>
    %cst_54 = arith.constant dense<0.000000e+00> : vector<64x128xf32>
    %71 = tpu.matmul %70, %61, %cst_54 {dimension_numbers = #tpu.dot_dimension_numbers<[1], [0], [0], [1], [0, 0, 1, 1], [], []>} : vector<64x32xf32>, vector<32x128xf32>, vector<64x128xf32> -> vector<64x128xf32>
    %72 = arith.addf %68, %71 : vector<64x128xf32>
    %c1_55 = arith.constant 1 : index
    %c0_56 = arith.constant 0 : index
    %c0_57 = arith.constant 0 : index
    %73 = vector.load %arg5[%c1_55, %c0_56, %c0_57] : memref<4x64x1xf32, #tpu.memory_space<vmem>>, vector<1x64x1xf32>
    %74 = vector.shape_cast %73 : vector<1x64x1xf32> to vector<64x1xf32>
    %75 = vector.broadcast %74 : vector<64x1xf32> to vector<64x128xf32>
    %76 = arith.addf %72, %75 : vector<64x128xf32>
    %77 = vector.extract_strided_slice %76 {offsets = [0, 0], sizes = [32, 128], strides = [1, 1]} : vector<64x128xf32> to vector<32x128xf32>
    %78 = math.tanh %77 : vector<32x128xf32>
    %79 = vector.extract_strided_slice %76 {offsets = [32, 0], sizes = [32, 128], strides = [1, 1]} : vector<64x128xf32> to vector<32x128xf32>
    %cst_58 = arith.constant 5.000000e-01 : f32
    %80 = vector.broadcast %cst_58 : f32 to vector<32x128xf32>
    %81 = arith.mulf %80, %79 : vector<32x128xf32>
    %82 = math.tanh %81 : vector<32x128xf32>
    %cst_59 = arith.constant 1.000000e+00 : f32
    %83 = vector.broadcast %cst_59 : f32 to vector<32x128xf32>
    %84 = arith.addf %82, %83 : vector<32x128xf32>
    %cst_60 = arith.constant 5.000000e-01 : f32
    %85 = vector.broadcast %cst_60 : f32 to vector<32x128xf32>
    %86 = arith.mulf %85, %84 : vector<32x128xf32>
    %87 = arith.mulf %78, %86 : vector<32x128xf32>
    %c1_61 = arith.constant 1 : index
    %c0_62 = arith.constant 0 : index
    %c0_63 = arith.constant 0 : index
    %88 = vector.load %arg6[%c1_61, %c0_62, %c0_63] : memref<4x32x32xf32, #tpu.memory_space<vmem>>, vector<1x32x32xf32>
    %89 = vector.shape_cast %88 : vector<1x32x32xf32> to vector<32x32xf32>
    %cst_64 = arith.constant dense<0.000000e+00> : vector<32x128xf32>
    %90 = tpu.matmul %89, %87, %cst_64 {dimension_numbers = #tpu.dot_dimension_numbers<[1], [0], [0], [1], [0, 0, 1, 1], [], []>} : vector<32x32xf32>, vector<32x128xf32>, vector<32x128xf32> -> vector<32x128xf32>
    %c1_65 = arith.constant 1 : index
    %c0_66 = arith.constant 0 : index
    %c0_67 = arith.constant 0 : index
    %91 = vector.load %arg7[%c1_65, %c0_66, %c0_67] : memref<4x32x1xf32, #tpu.memory_space<vmem>>, vector<1x32x1xf32>
    %92 = vector.shape_cast %91 : vector<1x32x1xf32> to vector<32x1xf32>
    %93 = vector.broadcast %92 : vector<32x1xf32> to vector<32x128xf32>
    %94 = arith.addf %90, %93 : vector<32x128xf32>
    %95 = arith.addf %51, %94 : vector<32x128xf32>
    %c4_i32 = arith.constant 4 : i32
    %96 = vector.broadcast %c4_i32 : i32 to vector<32x128xi32>
    %97 = arith.cmpi sge, %7, %96 : vector<32x128xi32>
    %c4_i32_68 = arith.constant 4 : i32
    %98 = tpu.dynamic_rotate %94 by %c4_i32_68 dim 1 : vector<32x128xf32>, i32 -> vector<32x128xf32>
    %cst_69 = arith.constant 0.000000e+00 : f32
    %99 = vector.broadcast %cst_69 : f32 to vector<32x128xf32>
    %100 = arith.select %97, %98, %99 : vector<32x128xi1>, vector<32x128xf32>
    %c124_i32 = arith.constant 124 : i32
    %101 = vector.broadcast %c124_i32 : i32 to vector<32x128xi32>
    %102 = arith.cmpi slt, %7, %101 : vector<32x128xi32>
    %c124_i32_70 = arith.constant 124 : i32
    %103 = tpu.dynamic_rotate %94 by %c124_i32_70 dim 1 : vector<32x128xf32>, i32 -> vector<32x128xf32>
    %cst_71 = arith.constant 0.000000e+00 : f32
    %104 = vector.broadcast %cst_71 : f32 to vector<32x128xf32>
    %105 = arith.select %102, %103, %104 : vector<32x128xi1>, vector<32x128xf32>
    %c2_72 = arith.constant 2 : index
    %c0_73 = arith.constant 0 : index
    %c0_74 = arith.constant 0 : index
    %c0_75 = arith.constant 0 : index
    %106 = vector.load %arg4[%c2_72, %c0_73, %c0_74, %c0_75] : memref<4x3x64x32xf32, #tpu.memory_space<vmem>>, vector<1x1x64x32xf32>
    %107 = vector.shape_cast %106 : vector<1x1x64x32xf32> to vector<64x32xf32>
    %cst_76 = arith.constant dense<0.000000e+00> : vector<64x128xf32>
    %108 = tpu.matmul %107, %100, %cst_76 {dimension_numbers = #tpu.dot_dimension_numbers<[1], [0], [0], [1], [0, 0, 1, 1], [], []>} : vector<64x32xf32>, vector<32x128xf32>, vector<64x128xf32> -> vector<64x128xf32>
    %c2_77 = arith.constant 2 : index
    %c1_78 = arith.constant 1 : index
    %c0_79 = arith.constant 0 : index
    %c0_80 = arith.constant 0 : index
    %109 = vector.load %arg4[%c2_77, %c1_78, %c0_79, %c0_80] : memref<4x3x64x32xf32, #tpu.memory_space<vmem>>, vector<1x1x64x32xf32>
    %110 = vector.shape_cast %109 : vector<1x1x64x32xf32> to vector<64x32xf32>
    %cst_81 = arith.constant dense<0.000000e+00> : vector<64x128xf32>
    %111 = tpu.matmul %110, %94, %cst_81 {dimension_numbers = #tpu.dot_dimension_numbers<[1], [0], [0], [1], [0, 0, 1, 1], [], []>} : vector<64x32xf32>, vector<32x128xf32>, vector<64x128xf32> -> vector<64x128xf32>
    %112 = arith.addf %108, %111 : vector<64x128xf32>
    %c2_82 = arith.constant 2 : index
    %c2_83 = arith.constant 2 : index
    %c0_84 = arith.constant 0 : index
    %c0_85 = arith.constant 0 : index
    %113 = vector.load %arg4[%c2_82, %c2_83, %c0_84, %c0_85] : memref<4x3x64x32xf32, #tpu.memory_space<vmem>>, vector<1x1x64x32xf32>
    %114 = vector.shape_cast %113 : vector<1x1x64x32xf32> to vector<64x32xf32>
    %cst_86 = arith.constant dense<0.000000e+00> : vector<64x128xf32>
    %115 = tpu.matmul %114, %105, %cst_86 {dimension_numbers = #tpu.dot_dimension_numbers<[1], [0], [0], [1], [0, 0, 1, 1], [], []>} : vector<64x32xf32>, vector<32x128xf32>, vector<64x128xf32> -> vector<64x128xf32>
    %116 = arith.addf %112, %115 : vector<64x128xf32>
    %c2_87 = arith.constant 2 : index
    %c0_88 = arith.constant 0 : index
    %c0_89 = arith.constant 0 : index
    %117 = vector.load %arg5[%c2_87, %c0_88, %c0_89] : memref<4x64x1xf32, #tpu.memory_space<vmem>>, vector<1x64x1xf32>
    %118 = vector.shape_cast %117 : vector<1x64x1xf32> to vector<64x1xf32>
    %119 = vector.broadcast %118 : vector<64x1xf32> to vector<64x128xf32>
    %120 = arith.addf %116, %119 : vector<64x128xf32>
    %121 = vector.extract_strided_slice %120 {offsets = [0, 0], sizes = [32, 128], strides = [1, 1]} : vector<64x128xf32> to vector<32x128xf32>
    %122 = math.tanh %121 : vector<32x128xf32>
    %123 = vector.extract_strided_slice %120 {offsets = [32, 0], sizes = [32, 128], strides = [1, 1]} : vector<64x128xf32> to vector<32x128xf32>
    %cst_90 = arith.constant 5.000000e-01 : f32
    %124 = vector.broadcast %cst_90 : f32 to vector<32x128xf32>
    %125 = arith.mulf %124, %123 : vector<32x128xf32>
    %126 = math.tanh %125 : vector<32x128xf32>
    %cst_91 = arith.constant 1.000000e+00 : f32
    %127 = vector.broadcast %cst_91 : f32 to vector<32x128xf32>
    %128 = arith.addf %126, %127 : vector<32x128xf32>
    %cst_92 = arith.constant 5.000000e-01 : f32
    %129 = vector.broadcast %cst_92 : f32 to vector<32x128xf32>
    %130 = arith.mulf %129, %128 : vector<32x128xf32>
    %131 = arith.mulf %122, %130 : vector<32x128xf32>
    %c2_93 = arith.constant 2 : index
    %c0_94 = arith.constant 0 : index
    %c0_95 = arith.constant 0 : index
    %132 = vector.load %arg6[%c2_93, %c0_94, %c0_95] : memref<4x32x32xf32, #tpu.memory_space<vmem>>, vector<1x32x32xf32>
    %133 = vector.shape_cast %132 : vector<1x32x32xf32> to vector<32x32xf32>
    %cst_96 = arith.constant dense<0.000000e+00> : vector<32x128xf32>
    %134 = tpu.matmul %133, %131, %cst_96 {dimension_numbers = #tpu.dot_dimension_numbers<[1], [0], [0], [1], [0, 0, 1, 1], [], []>} : vector<32x32xf32>, vector<32x128xf32>, vector<32x128xf32> -> vector<32x128xf32>
    %c2_97 = arith.constant 2 : index
    %c0_98 = arith.constant 0 : index
    %c0_99 = arith.constant 0 : index
    %135 = vector.load %arg7[%c2_97, %c0_98, %c0_99] : memref<4x32x1xf32, #tpu.memory_space<vmem>>, vector<1x32x1xf32>
    %136 = vector.shape_cast %135 : vector<1x32x1xf32> to vector<32x1xf32>
    %137 = vector.broadcast %136 : vector<32x1xf32> to vector<32x128xf32>
    %138 = arith.addf %134, %137 : vector<32x128xf32>
    %139 = arith.addf %95, %138 : vector<32x128xf32>
    %c8_i32 = arith.constant 8 : i32
    %140 = vector.broadcast %c8_i32 : i32 to vector<32x128xi32>
    %141 = arith.cmpi sge, %7, %140 : vector<32x128xi32>
    %c8_i32_100 = arith.constant 8 : i32
    %142 = tpu.dynamic_rotate %138 by %c8_i32_100 dim 1 : vector<32x128xf32>, i32 -> vector<32x128xf32>
    %cst_101 = arith.constant 0.000000e+00 : f32
    %143 = vector.broadcast %cst_101 : f32 to vector<32x128xf32>
    %144 = arith.select %141, %142, %143 : vector<32x128xi1>, vector<32x128xf32>
    %c120_i32 = arith.constant 120 : i32
    %145 = vector.broadcast %c120_i32 : i32 to vector<32x128xi32>
    %146 = arith.cmpi slt, %7, %145 : vector<32x128xi32>
    %c120_i32_102 = arith.constant 120 : i32
    %147 = tpu.dynamic_rotate %138 by %c120_i32_102 dim 1 : vector<32x128xf32>, i32 -> vector<32x128xf32>
    %cst_103 = arith.constant 0.000000e+00 : f32
    %148 = vector.broadcast %cst_103 : f32 to vector<32x128xf32>
    %149 = arith.select %146, %147, %148 : vector<32x128xi1>, vector<32x128xf32>
    %c3 = arith.constant 3 : index
    %c0_104 = arith.constant 0 : index
    %c0_105 = arith.constant 0 : index
    %c0_106 = arith.constant 0 : index
    %150 = vector.load %arg4[%c3, %c0_104, %c0_105, %c0_106] : memref<4x3x64x32xf32, #tpu.memory_space<vmem>>, vector<1x1x64x32xf32>
    %151 = vector.shape_cast %150 : vector<1x1x64x32xf32> to vector<64x32xf32>
    %cst_107 = arith.constant dense<0.000000e+00> : vector<64x128xf32>
    %152 = tpu.matmul %151, %144, %cst_107 {dimension_numbers = #tpu.dot_dimension_numbers<[1], [0], [0], [1], [0, 0, 1, 1], [], []>} : vector<64x32xf32>, vector<32x128xf32>, vector<64x128xf32> -> vector<64x128xf32>
    %c3_108 = arith.constant 3 : index
    %c1_109 = arith.constant 1 : index
    %c0_110 = arith.constant 0 : index
    %c0_111 = arith.constant 0 : index
    %153 = vector.load %arg4[%c3_108, %c1_109, %c0_110, %c0_111] : memref<4x3x64x32xf32, #tpu.memory_space<vmem>>, vector<1x1x64x32xf32>
    %154 = vector.shape_cast %153 : vector<1x1x64x32xf32> to vector<64x32xf32>
    %cst_112 = arith.constant dense<0.000000e+00> : vector<64x128xf32>
    %155 = tpu.matmul %154, %138, %cst_112 {dimension_numbers = #tpu.dot_dimension_numbers<[1], [0], [0], [1], [0, 0, 1, 1], [], []>} : vector<64x32xf32>, vector<32x128xf32>, vector<64x128xf32> -> vector<64x128xf32>
    %156 = arith.addf %152, %155 : vector<64x128xf32>
    %c3_113 = arith.constant 3 : index
    %c2_114 = arith.constant 2 : index
    %c0_115 = arith.constant 0 : index
    %c0_116 = arith.constant 0 : index
    %157 = vector.load %arg4[%c3_113, %c2_114, %c0_115, %c0_116] : memref<4x3x64x32xf32, #tpu.memory_space<vmem>>, vector<1x1x64x32xf32>
    %158 = vector.shape_cast %157 : vector<1x1x64x32xf32> to vector<64x32xf32>
    %cst_117 = arith.constant dense<0.000000e+00> : vector<64x128xf32>
    %159 = tpu.matmul %158, %149, %cst_117 {dimension_numbers = #tpu.dot_dimension_numbers<[1], [0], [0], [1], [0, 0, 1, 1], [], []>} : vector<64x32xf32>, vector<32x128xf32>, vector<64x128xf32> -> vector<64x128xf32>
    %160 = arith.addf %156, %159 : vector<64x128xf32>
    %c3_118 = arith.constant 3 : index
    %c0_119 = arith.constant 0 : index
    %c0_120 = arith.constant 0 : index
    %161 = vector.load %arg5[%c3_118, %c0_119, %c0_120] : memref<4x64x1xf32, #tpu.memory_space<vmem>>, vector<1x64x1xf32>
    %162 = vector.shape_cast %161 : vector<1x64x1xf32> to vector<64x1xf32>
    %163 = vector.broadcast %162 : vector<64x1xf32> to vector<64x128xf32>
    %164 = arith.addf %160, %163 : vector<64x128xf32>
    %165 = vector.extract_strided_slice %164 {offsets = [0, 0], sizes = [32, 128], strides = [1, 1]} : vector<64x128xf32> to vector<32x128xf32>
    %166 = math.tanh %165 : vector<32x128xf32>
    %167 = vector.extract_strided_slice %164 {offsets = [32, 0], sizes = [32, 128], strides = [1, 1]} : vector<64x128xf32> to vector<32x128xf32>
    %cst_121 = arith.constant 5.000000e-01 : f32
    %168 = vector.broadcast %cst_121 : f32 to vector<32x128xf32>
    %169 = arith.mulf %168, %167 : vector<32x128xf32>
    %170 = math.tanh %169 : vector<32x128xf32>
    %cst_122 = arith.constant 1.000000e+00 : f32
    %171 = vector.broadcast %cst_122 : f32 to vector<32x128xf32>
    %172 = arith.addf %170, %171 : vector<32x128xf32>
    %cst_123 = arith.constant 5.000000e-01 : f32
    %173 = vector.broadcast %cst_123 : f32 to vector<32x128xf32>
    %174 = arith.mulf %173, %172 : vector<32x128xf32>
    %175 = arith.mulf %166, %174 : vector<32x128xf32>
    %c3_124 = arith.constant 3 : index
    %c0_125 = arith.constant 0 : index
    %c0_126 = arith.constant 0 : index
    %176 = vector.load %arg6[%c3_124, %c0_125, %c0_126] : memref<4x32x32xf32, #tpu.memory_space<vmem>>, vector<1x32x32xf32>
    %177 = vector.shape_cast %176 : vector<1x32x32xf32> to vector<32x32xf32>
    %cst_127 = arith.constant dense<0.000000e+00> : vector<32x128xf32>
    %178 = tpu.matmul %177, %175, %cst_127 {dimension_numbers = #tpu.dot_dimension_numbers<[1], [0], [0], [1], [0, 0, 1, 1], [], []>} : vector<32x32xf32>, vector<32x128xf32>, vector<32x128xf32> -> vector<32x128xf32>
    %c3_128 = arith.constant 3 : index
    %c0_129 = arith.constant 0 : index
    %c0_130 = arith.constant 0 : index
    %179 = vector.load %arg7[%c3_128, %c0_129, %c0_130] : memref<4x32x1xf32, #tpu.memory_space<vmem>>, vector<1x32x1xf32>
    %180 = vector.shape_cast %179 : vector<1x32x1xf32> to vector<32x1xf32>
    %181 = vector.broadcast %180 : vector<32x1xf32> to vector<32x128xf32>
    %182 = arith.addf %178, %181 : vector<32x128xf32>
    %183 = arith.addf %139, %182 : vector<32x128xf32>
    %c0_131 = arith.constant 0 : index
    %c0_132 = arith.constant 0 : index
    %c0_133 = arith.constant 0 : index
    %184 = vector.load %arg8[%c0_131, %c0_132, %c0_133] : memref<1x32x128xf32, #tpu.memory_space<vmem>>, vector<1x32x128xf32>
    %185 = vector.shape_cast %184 : vector<1x32x128xf32> to vector<32x128xf32>
    %186 = vector.shape_cast %183 : vector<32x128xf32> to vector<1x32x128xf32>
    tpu.vector_store %arg8[%c0_131, %c0_132, %c0_133], %186 {strides = array<i32>} : memref<1x32x128xf32, #tpu.memory_space<vmem>>, vector<1x32x128xf32>,
    return
  }
  func.func @transform_0(%arg0: i32) -> (i32, i32, i32) {
    %c0_i32 = arith.constant 0 : i32
    %c0_i32_0 = arith.constant 0 : i32
    %c0_i32_1 = arith.constant 0 : i32
    return %arg0, %c0_i32, %c0_i32_0 : i32, i32, i32
  }
  func.func @transform_1(%arg0: i32) -> (i32, i32) {
    %c0_i32 = arith.constant 0 : i32
    %c0_i32_0 = arith.constant 0 : i32
    %c0_i32_1 = arith.constant 0 : i32
    return %c0_i32, %c0_i32_0 : i32, i32
  }
  func.func @transform_2(%arg0: i32) -> (i32, i32) {
    %c0_i32 = arith.constant 0 : i32
    %c0_i32_0 = arith.constant 0 : i32
    %c0_i32_1 = arith.constant 0 : i32
    return %c0_i32, %c0_i32_0 : i32, i32
  }
  func.func @transform_3(%arg0: i32) -> (i32, i32, i32, i32) {
    %c0_i32 = arith.constant 0 : i32
    %c0_i32_0 = arith.constant 0 : i32
    %c0_i32_1 = arith.constant 0 : i32
    %c0_i32_2 = arith.constant 0 : i32
    %c0_i32_3 = arith.constant 0 : i32
    return %c0_i32, %c0_i32_0, %c0_i32_1, %c0_i32_2 : i32, i32, i32, i32
  }
  func.func @transform_4(%arg0: i32) -> (i32, i32, i32) {
    %c0_i32 = arith.constant 0 : i32
    %c0_i32_0 = arith.constant 0 : i32
    %c0_i32_1 = arith.constant 0 : i32
    %c0_i32_2 = arith.constant 0 : i32
    return %c0_i32, %c0_i32_0, %c0_i32_1 : i32, i32, i32
  }
  func.func @transform_5(%arg0: i32) -> (i32, i32, i32) {
    %c0_i32 = arith.constant 0 : i32
    %c0_i32_0 = arith.constant 0 : i32
    %c0_i32_1 = arith.constant 0 : i32
    %c0_i32_2 = arith.constant 0 : i32
    return %c0_i32, %c0_i32_0, %c0_i32_1 : i32, i32, i32
  }
  func.func @transform_6(%arg0: i32) -> (i32, i32, i32) {
    %c0_i32 = arith.constant 0 : i32
    %c0_i32_0 = arith.constant 0 : i32
    %c0_i32_1 = arith.constant 0 : i32
    %c0_i32_2 = arith.constant 0 : i32
    return %c0_i32, %c0_i32_0, %c0_i32_1 : i32, i32, i32
  }
  func.func @transform_7(%arg0: i32) -> (i32, i32, i32) {
    %c0_i32 = arith.constant 0 : i32
    %c0_i32_0 = arith.constant 0 : i32
    %c0_i32_1 = arith.constant 0 : i32
    return %arg0, %c0_i32, %c0_i32_0 : i32, i32, i32
  }
}

</mosaic_0001>

<bundles_post_ra>
// kernel: wave_block_pallas.1
= control target key start
LH: loop header
LB: loop body
LE: loop exit
PB: predicated region body
PF: predicated region fallthrough
CT: control target
= control target key end

     0   :  { %12 = vsyncpa [#allocation3], 0  ;;  %s5083_s0 = inlined_call_operand.vmem [shape: f32[2,16,128], index: 0, kind: input, shape index: {}]   ;;  %s5084_s1 = inlined_call_operand.vmem [shape: f32[32,16], index: 1, kind: input, shape index: {}]   ;;  %s5085_s2 = inlined_call_operand.vmem [shape: f32[32,1], index: 2, kind: input, shape index: {}]   ;;  %s5086_s3 = inlined_call_operand.vmem [shape: f32[4,3,64,32], index: 3, kind: input, shape index: {}]   ;;  %s5087_s4 = inlined_call_operand.vmem [shape: f32[4,64,1], index: 4, kind: input, shape index: {}]   ;;  %s5088_s5 = inlined_call_operand.vmem [shape: f32[4,32,32], index: 5, kind: input, shape index: {}]   ;;  %s5089_s6 = inlined_call_operand.vmem [shape: f32[4,32,1], index: 6, kind: input, shape index: {}]   ;;  %s5090_s7 = inlined_call_operand.hbm [shape: f32[2,32,128], index: 7, kind: output, shape index: {}]  }
   0x1   :  { %14 = vsyncpa [#allocation3 + $0x1], 0  ;;  %s4138_s24 = smov 0   ;;  %s4140_s25 = smov 0  }
   0x2   :  { %s4142_s26 = smov 0   ;;  %s4144_s27 = smov 0  }
   0x3 LB: > { %s4159_s28 = sadd.s32 4294967295, %s4085_s27   ;;  %s3124_s29 = sadd.s32 4294967294, %s4085_s27   ;;  %s4085_s27 = sphi %s4144_s27, %s5096_s27   ;;  %s4081_s26 = sphi %s4142_s26, %s5095_s26   ;;  %s4077_s25 = sphi %s4140_s25, %s5094_s25   ;;  %s4073_s24 = sphi %s4138_s24, %s5093_s24  }
   0x4   : > { %s4163_s30 = sadd.s32 1, %s4085_s27   ;;  %s179_s8 = sadd.s32 1, %s4081_s26 }
   0x5   : > { %s176_s9 = ssub.s32 %s4085_s27, %s4163_s30  ;;  %p189_p0 = scmp.ne.s32.totalorder %s4081_s26, %s4077_s25 }
   0x6   : > { %p177_p1 = scmp.eq.s32.totalorder %s176_s9, 0  ;;  %p190_p2 = scmp.eq.s32.totalorder %s4159_s28, 1 }
   0x7   : > { %p195_p3 = scmp.ne.s32.totalorder %s4077_s25, %s4073_s24  ;;  %p196_p4 = scmp.eq.s32.totalorder %s3124_s29, 1 }
   0x8   : > { %s4174_s10 = scalar_select %p177_p1, %s4081_s26, %s179_s8  }
   0x9   : > { %p4176_p5 = por %p190_p2, %p189_p0  ;;  %p4180_p6 = por %p196_p4, %p195_p3 }
   0xa   : > { %p3127_p7 = scmp.ge.s32.totalorder %s4085_s27, 1  ;;  %p240_p8 = scmp.lt.s32.totalorder %s4085_s27, 3 }
   0xc   : > { %p241_p9 = pnand %p3127_p7, %p240_p8 }
   0xd   : > { %p272_p10 = scmp.lt.s32.totalorder (!%p241_p9), %s4159_s28, 1  ;;  %s4088_s29 = smov (!%p241_p9), 1  }
   0xe   : > { %244 = sbr.rel (%p241_p9) target bundleno = 2521 (0x9d9), region = 48  ;;  %s4089_s8 = smov (!%p241_p9), 127  }
   0xf   : > { %s4091_s23 = smov (!%p241_p9), 126   ;;  %s4092_s20 = smov (!%p241_p9), 4  }
  0x10   : > { %s4093_s21 = smov (!%p241_p9), 124   ;;  %s4094_s18 = smov (!%p241_p9), 8  }
  0x11   : > { %s269_s17 = sand.u32 (!%p241_p9), 1, %s4077_s25   ;;  %s3421_s9 = sshll.u32 (!%p241_p9), %s4159_s28, 9 }
  0x12   : > { %s4096_s15 = smov (!%p241_p9), [#allocation2]  }
  0x13   : > { %v279_v0 = vld [vmem:[%s5084_s1] sm:$0xff]  ;;  %vm307_vm0 = vcmask 130048   ;;  %v4087_v1 = vmov 0   ;;  %v284_v2 = vld [vmem:[%s5085_s2 + $0x8] sm:$0xff]  ;;  %v286_v3 = vld [vmem:[%s5085_s2 + $0x18] sm:$0xff]  ;;  %s273_s19 = scalar_select %p272_p10, %s4159_s28, 1  ;;  %v405_v45 = vlaneseq }
  0x14   : > { %3608 = vmatprep.mubr.msk.f32.mxu0 %vm307_vm0, %v279_v0  ;;  %3960 = vset.pattern.permute.xlu1 %v4087_v1  ;;  %v283_v4 = vld [vmem:[%s5085_s2] sm:$0xff]  ;;  %v285_v5 = vld [vmem:[%s5085_s2 + $0x10] sm:$0xff]  ;;  %v280_v8 = vld [vmem:[%s5084_s1 + $0x8] sm:$0xff]  ;;  %vm450_vm1 = vcmask 261120  }
  0x15   : > { %294 = vperm.xlu1 %3960, %v284_v2   ;;  %3959 = vset.pattern.permute.xlu0 %v4087_v1  ;;  %s3420_s22 = sshll.u32 %s273_s19, 4  ;;  %v281_v9 = vld [vmem:[%s5084_s1 + $0x10] sm:$0xff]  ;;  %v282_v10 = vld [vmem:[%s5084_s1 + $0x18] sm:$0xff]  ;;  %v3135_v11 = vld [vmem:[%s5086_s3 + $0x40] sm:$0xff]  ;;  %v4319_v46 = vand.u32 127, %v405_v45  ;;  %s4095_s19 = smov 120  }
  0x16   : > { %304 = vperm.xlu0 %3959, %v286_v3   ;;  %s276_s13 = scalar_lea.vmem %s5083_s0, %s3420_s22  ;;  %3622 = vmatprep.mubr.msk.f32.mxu1 %vm450_vm1, %v3135_v11  ;;  %v433_v15 = vld [vmem:[%s5086_s3] sm:$0xff]  ;;  %v3136_v25 = vld [vmem:[%s5086_s3 + $0x48] sm:$0xff]  ;;  %v3137_v26 = vld [vmem:[%s5086_s3 + $0x50] sm:$0xff]  ;;  %s4090_s22 = smov 2  }
  0x17   : > { %v278_v6 = vld [vmem:[%s276_s13 + $0x8] sm:$0xff]  ;;  %v277_v7 = vld [vmem:[%s276_s13] sm:$0xff]  ;;  %v3138_v27 = vld [vmem:[%s5086_s3 + $0x58] sm:$0xff]  ;;  %vm407_vm2 = vcmp.ge.s32.totalorder %v4319_v46, 1  ;;  %vm420_vm3 = vcmp.lt.s32.totalorder %v4319_v46, 127  ;;  %vm1064_vm4 = vcmp.ge.s32.totalorder %v4319_v46, 2 }
  0x18   : > { %3604 = vmatprep.subr.mxu0 %v278_v6  ;;  %v3139_v28 = vld [vmem:[%s5086_s3 + $0x60] sm:$0xff]  ;;  %v861_v29 = vld [vmem:[%s5087_s4 + $0x30] sm:$0xff]  ;;  %v862_v30 = vld [vmem:[%s5087_s4 + $0x38] sm:$0xff]  ;;  %vm1077_vm5 = vcmp.lt.s32.totalorder %v4319_v46, 126  ;;  %vm1724_vm6 = vcmp.ge.s32.totalorder %v4319_v46, 4  ;;  %vm1737_vm7 = vcmp.lt.s32.totalorder %v4319_v46, 124 }
  0x19   : > { %289 = vperm.xlu1 %3960, %v283_v4   ;;  %3605 = vmatpush3.msra.mxu0 %v278_v6  ;;  %v3140_v31 = vld [vmem:[%s5086_s3 + $0x68] sm:$0xff]  ;;  %v3141_v32 = vld [vmem:[%s5086_s3 + $0x70] sm:$0xff]  ;;  %v858_v33 = vld [vmem:[%s5087_s4 + $0x18] sm:$0xff]  ;;  %vm2384_vm8 = vcmp.ge.s32.totalorder %v4319_v46, 8  ;;  %vm2397_vm9 = vcmp.lt.s32.totalorder %v4319_v46, 120 }
  0x1a   : > { %299 = vperm.xlu0 %3959, %v285_v5   ;;  %3606 = vmatprep.subr.mxu0 %v277_v7  ;;  %v860_v34 = vld [vmem:[%s5087_s4 + $0x28] sm:$0xff]  ;;  %v3142_v35 = vld [vmem:[%s5086_s3 + $0x78] sm:$0xff]  ;;  %v3163_v36 = vld [vmem:[%s5086_s3 + $0x80] sm:$0xff] }
  0x1b   : > { %3607 = vmatpush3.msra.mxu0 %v277_v7  ;;  %v857_v37 = vld [vmem:[%s5087_s4 + $0x10] sm:$0xff]  ;;  %v859_v38 = vld [vmem:[%s5087_s4 + $0x20] sm:$0xff]  ;;  %v856_v40 = vld [vmem:[%s5087_s4 + $0x8] sm:$0xff] }
  0x1c   : > { %3609 = vmatmul.mubr.msk.f32.vlgmr.msra.gmra.mxu0 %vm307_vm0, %v280_v8  ;;  %v855_v39 = vld [vmem:[%s5087_s4] sm:$0xff]  ;;  %v941_v41 = vld [vmem:[%s5089_s6 + $0x10] sm:$0xff]  ;;  %v942_v42 = vld [vmem:[%s5089_s6 + $0x18] sm:$0xff] }
  0x1d   : > { %3611 = vmatprep.mubr.msk.f32.mxu0 %vm307_vm0, %v281_v9  ;;  %v939_v43 = vld [vmem:[%s5089_s6] sm:$0xff]  ;;  %v940_v44 = vld [vmem:[%s5089_s6 + $0x8] sm:$0xff]  ;;  %v435_v53 = vld [vmem:[%s5086_s3 + $0x10] sm:$0xff] }
  0x1e   : > { %v434_v52 = vld [vmem:[%s5086_s3 + $0x8] sm:$0xff]  ;;  %v436_v55 = vld [vmem:[%s5086_s3 + $0x18] sm:$0xff]  ;;  %v437_v56 = vld [vmem:[%s5086_s3 + $0x20] sm:$0xff] }
  0x1f   : > { %v438_v59 = vld [vmem:[%s5086_s3 + $0x28] sm:$0xff]  ;;  %v439_v61 = vld [vmem:[%s5086_s3 + $0x30] sm:$0xff]  ;;  %v440_v63 = vld [vmem:[%s5086_s3 + $0x38] sm:$0xff] }
  0x20   : > { %3612 = vmatmul.mubr.msk.f32.gmra.mxu0 %vm307_vm0, %v282_v10  ;;  %v3164_v60 = vld [vmem:[%s5086_s3 + $0x88] sm:$0xff]  ;;  %v3165_v62 = vld [vmem:[%s5086_s3 + $0x90] sm:$0xff]  ;;  %v3166_v0 = vld [vmem:[%s5086_s3 + $0x98] sm:$0xff] }
  0x21   : > { %3642 = vmatprep.mubr.msk.f32.mxu0 %vm450_vm1, %v433_v15  ;;  %v3167_v1 = vld [vmem:[%s5086_s3 + $0xa0] sm:$0xff]  ;;  %v3168_v2 = vld [vmem:[%s5086_s3 + $0xa8] sm:$0xff]  ;;  %v3169_v3 = vld [vmem:[%s5086_s3 + $0xb0] sm:$0xff] }
  0x22   : > { %v3170_v4 = vld [vmem:[%s5086_s3 + $0xb8] sm:$0xff]  ;;  %v935_v5 = vld [vmem:[%s5088_s5] sm:$0xff] }
  0x23   : > { %v3379_v46 = vld [vmem:[%s5086_s3 + $0x2e0] sm:$0xff] }
  0x90   : > { %v295_v12 = vpop.permute.xlu1 %294 }
  0x91   : > { %v305_v13 = vpop.permute.xlu0 %304 }
  0x94   : > { %v290_v23 = vpop.permute.xlu1 %289 }
  0x95   : > { %v300_v20 = vpop.permute.xlu0 %299 }
  0xdc   : > { %v3610_v14 = vpop.f32.mrf.mxu0 }
  0xdd   : > { %v4226_v16 = vadd.f32 %v3610_v14, %v295_v12 }
  0xde   : > { %v386_v17 = vpop.f32.mrf.mxu0 }
  0xdf   : > { %410 = vrot.lane.b32.xlu1 %v4226_v16, %s4088_s29  ;;  %v4240_v24 = vadd.f32 %v386_v17, %v290_v23 }
  0xe0   : > { %v3613_v18 = vpop.f32.mrf.mxu0 }
  0xe1   : > { %v4230_v19 = vadd.f32 %v3613_v18, %v305_v13 }
  0xe2   : > { %v396_v21 = vpop.f32.mrf.mxu0 }
  0xe3   : > { %v4232_v22 = vadd.f32 %v396_v21, %v300_v20  ;;  %414 = vrot.lane.b32.xlu0 %v4230_v19, %s4088_s29  ;;  %3614 = vmatprep.subr.mxu1 %v4230_v19 }
  0xe4   : > { %3615 = vmatpush3.msra.mxu1 %v4230_v19 }
  0xe5   : > { %412 = vrot.lane.b32.xlu1 %v4232_v22, %s4088_s29  ;;  %3616 = vmatprep.subr.mxu1 %v4232_v22 }
  0xe6   : > { %3617 = vmatpush3.msra.mxu1 %v4232_v22 }
  0xe7   : > { %427 = vrot.lane.b32.xlu0 %v4230_v19, %s4089_s8  ;;  %3618 = vmatprep.subr.mxu1 %v4226_v16 }
  0xe8   : > { %3619 = vmatpush3.msra.mxu1 %v4226_v16 }
  0xe9   : > { %408 = vrot.lane.b32.xlu1 %v4240_v24, %s4088_s29  ;;  %3620 = vmatprep.subr.mxu1 %v4240_v24 }
  0xea   : > { %3621 = vmatpush3.msra.mxu1 %v4240_v24 }
  0xeb   : > { %425 = vrot.lane.b32.xlu0 %v4232_v22, %s4089_s8  ;;  %3623 = vmatmul.mubr.msk.f32.vlgmr.msra.gmra.mxu1 %vm450_vm1, %v3136_v25 }
  0xec   : > { %3625 = vmatprep.mubr.msk.f32.mxu1 %vm450_vm1, %v3137_v26 }
  0xed   : > { %421 = vrot.lane.b32.xlu1 %v4240_v24, %s4089_s8 }
  0xef   : > { %423 = vrot.lane.b32.xlu0 %v4226_v16, %s4089_s8  ;;  %3626 = vmatmul.mubr.msk.f32.gmra.mxu1 %vm450_vm1, %v3138_v27 }
  0xf0   : > { %3628 = vmatprep.mubr.msk.f32.mxu1 %vm450_vm1, %v3139_v28 }
  0xf1   : > { %895 = vperm.xlu1 %3960, %v861_v29  }
  0xf3   : > { %900 = vperm.xlu0 %3959, %v862_v30   ;;  %3629 = vmatmul.mubr.msk.f32.gmra.mxu1 %vm450_vm1, %v3140_v31 }
  0xf4   : > { %3631 = vmatprep.mubr.msk.f32.mxu1 %vm450_vm1, %v3141_v32 }
  0xf5   : > { %880 = vperm.xlu1 %3960, %v858_v33  }
  0xf7   : > { %890 = vperm.xlu0 %3959, %v860_v34   ;;  %3632 = vmatmul.mubr.msk.f32.gmra.mxu1 %vm450_vm1, %v3142_v35 }
  0xf8   : > { %3662 = vmatprep.mubr.msk.f32.mxu1 %vm450_vm1, %v3163_v36 }
  0xf9   : > { %875 = vperm.xlu1 %3960, %v857_v37  }
  0xfb   : > { %885 = vperm.xlu0 %3959, %v859_v38  }
  0xfd   : > { %865 = vperm.xlu1 %3960, %v855_v39  }
  0xff   : > { %870 = vperm.xlu0 %3959, %v856_v40  }
 0x101   : > { %955 = vperm.xlu1 %3960, %v941_v41  }
 0x103   : > { %960 = vperm.xlu0 %3959, %v942_v42  }
 0x105   : > { %945 = vperm.xlu1 %3960, %v939_v43  }
 0x107   : > { %950 = vperm.xlu0 %3959, %v940_v44  }
 0x151   : > { %v411_v47 = vpop.permute.xlu1 %410 }
 0x155   : > { %v415_v48 = vpop.permute.xlu0 %414 }
 0x156   : > { %3634 = vmatprep.subr.msk.mxu0 %vm407_vm2, %v415_v48 }
 0x157   : > { %3635 = vmatpush3.msk.msra.mxu0 %vm407_vm2, %v415_v48  ;;  %v413_v49 = vpop.permute.xlu1 %412 }
 0x158   : > { %3636 = vmatprep.subr.msk.mxu0 %vm407_vm2, %v413_v49 }
 0x159   : > { %v428_v50 = vpop.permute.xlu0 %427  ;;  %3637 = vmatpush3.msk.msra.mxu0 %vm407_vm2, %v413_v49 }
 0x15a   : > { %3638 = vmatprep.subr.msk.mxu0 %vm407_vm2, %v411_v47  ;;  %3654 = vmatprep.subr.msk.mxu1 %vm420_vm3, %v428_v50 }
 0x15b   : > { %3639 = vmatpush3.msk.msra.mxu0 %vm407_vm2, %v411_v47  ;;  %v409_v51 = vpop.permute.xlu1 %408  ;;  %3655 = vmatpush3.msk.msra.mxu1 %vm420_vm3, %v428_v50 }
 0x15c   : > { %3640 = vmatprep.subr.msk.mxu0 %vm407_vm2, %v409_v51 }
 0x15d   : > { %v426_v54 = vpop.permute.xlu0 %425  ;;  %3641 = vmatpush3.msk.msra.mxu0 %vm407_vm2, %v409_v51 }
 0x15e   : > { %3643 = vmatmul.mubr.msk.f32.vlgmr.msra.gmra.mxu0 %vm450_vm1, %v434_v52  ;;  %3656 = vmatprep.subr.msk.mxu1 %vm420_vm3, %v426_v54 }
 0x15f   : > { %3657 = vmatpush3.msk.msra.mxu1 %vm420_vm3, %v426_v54  ;;  %3645 = vmatprep.mubr.msk.f32.mxu0 %vm450_vm1, %v435_v53  ;;  %v422_v58 = vpop.permute.xlu1 %421 }
 0x161   : > { %v424_v57 = vpop.permute.xlu0 %423 }
 0x162   : > { %3646 = vmatmul.mubr.msk.f32.gmra.mxu0 %vm450_vm1, %v436_v55  ;;  %3658 = vmatprep.subr.msk.mxu1 %vm420_vm3, %v424_v57 }
 0x163   : > { %3659 = vmatpush3.msk.msra.mxu1 %vm420_vm3, %v424_v57  ;;  %3648 = vmatprep.mubr.msk.f32.mxu0 %vm450_vm1, %v437_v56 }
 0x164   : > { %3660 = vmatprep.subr.msk.mxu1 %vm420_vm3, %v422_v58 }
 0x165   : > { %3661 = vmatpush3.msk.msra.mxu1 %vm420_vm3, %v422_v58 }
 0x166   : > { %3649 = vmatmul.mubr.msk.f32.gmra.mxu0 %vm450_vm1, %v438_v59  ;;  %3663 = vmatmul.mubr.msk.f32.vlgmr.msra.gmra.mxu1 %vm450_vm1, %v3164_v60 }
 0x167   : > { %3651 = vmatprep.mubr.msk.f32.mxu0 %vm450_vm1, %v439_v61  ;;  %3665 = vmatprep.mubr.msk.f32.mxu1 %vm450_vm1, %v3165_v62 }
 0x16a   : > { %3652 = vmatmul.mubr.msk.f32.gmra.mxu0 %vm450_vm1, %v440_v63  ;;  %3666 = vmatmul.mubr.msk.f32.gmra.mxu1 %vm450_vm1, %v3166_v0 }
 0x16b   : > { %3668 = vmatprep.mubr.msk.f32.mxu1 %vm450_vm1, %v3167_v1  ;;  %3682 = vmatprep.mubr.msk.f32.mxu0 %vm450_vm1, %v935_v5 }
 0x16c   : > { %v896_v28 = vpop.permute.xlu1 %895 }
 0x16e   : > { %3669 = vmatmul.mubr.msk.f32.gmra.mxu1 %vm450_vm1, %v3168_v2  ;;  %v901_v20 = vpop.permute.xlu0 %900 }
 0x16f   : > { %3671 = vmatprep.mubr.msk.f32.mxu1 %vm450_vm1, %v3169_v3 }
 0x170   : > { %v881_v38 = vpop.permute.xlu1 %880 }
 0x172   : > { %3672 = vmatmul.mubr.msk.f32.gmra.mxu1 %vm450_vm1, %v3170_v4  ;;  %v891_v29 = vpop.permute.xlu0 %890 }
 0x174   : > { %v876_v60 = vpop.permute.xlu1 %875 }
 0x176   : > { %v886_v42 = vpop.permute.xlu0 %885 }
 0x178   : > { %v866_v5 = vpop.permute.xlu1 %865 }
 0x17a   : > { %v871_v3 = vpop.permute.xlu0 %870 }
 0x1ab   : > { %v3624_v6 = vpop.f32.mrf.mxu1 }
 0x1ad   : > { %v541_v7 = vpop.f32.mrf.mxu1 }
 0x1af   : > { %v3627_v8 = vpop.f32.mrf.mxu1 }
 0x1b1   : > { %v551_v9 = vpop.f32.mrf.mxu1 }
 0x1b3   : > { %v3630_v10 = vpop.f32.mrf.mxu1 }
 0x1b5   : > { %v561_v11 = vpop.f32.mrf.mxu1 }
 0x1b7   : > { %v3633_v13 = vpop.f32.mrf.mxu1 }
 0x1b9   : > { %v571_v17 = vpop.f32.mrf.mxu1 }
 0x21e   : > { %v3644_v12 = vpop.f32.mrf.mxu0 }
 0x21f   : > { %v676_v56 = vadd.f32 %v3644_v12, %v3624_v6 }
 0x220   : > { %v670_v14 = vpop.f32.mrf.mxu0 }
 0x221   : > { %v671_v61 = vadd.f32 %v670_v14, %v541_v7 }
 0x222   : > { %v3647_v15 = vpop.f32.mrf.mxu0 }
 0x223   : > { %v686_v43 = vadd.f32 %v3647_v15, %v3627_v8 }
 0x224   : > { %v680_v18 = vpop.f32.mrf.mxu0 }
 0x225   : > { %v681_v50 = vadd.f32 %v680_v18, %v551_v9 }
 0x226   : > { %v3650_v21 = vpop.f32.mrf.mxu0  ;;  %v3664_v23 = vpop.f32.mrf.mxu1 }
 0x227   : > { %v696_v32 = vadd.f32 %v3650_v21, %v3630_v10  ;;  %v848_v62 = vadd.f32 %v3664_v23, %v676_v56  ;;  %v3201_v56 = vld [vmem:[%s5086_s3 + $0x130] sm:$0xff] }
 0x228   : > { %v690_v25 = vpop.f32.mrf.mxu0  ;;  %v808_v26 = vpop.f32.mrf.mxu1 }
 0x229   : > { %v691_v34 = vadd.f32 %v690_v25, %v561_v11  ;;  %v847_v1 = vadd.f32 %v808_v26, %v671_v61  ;;  %v904_v4 = vadd.f32 %v871_v3, %v848_v62  ;;  %v3245_v61 = vld [vmem:[%s5087_s4 + $0x50] sm:$0xff]  ;;  %v3247_v62 = vld [vmem:[%s5087_s4 + $0x60] sm:$0xff] }
 0x22a   : > { %v3667_v27 = vpop.f32.mrf.mxu1  ;;  %v3653_v30 = vpop.f32.mrf.mxu0  ;;  %v3255_v3 = vld [vmem:[%s5089_s6 + $0x20] sm:$0xff] }
 0x22b   : > { %v706_v39 = vadd.f32 %v3653_v30, %v3633_v13  ;;  %v850_v52 = vadd.f32 %v3667_v27, %v686_v43  ;;  %v903_v8 = vadd.f32 %v866_v5, %v847_v1  ;;  %v3257_v1 = vld [vmem:[%s5089_s6 + $0x30] sm:$0xff] }
 0x22c   : > { %v818_v31 = vpop.f32.mrf.mxu1  ;;  %v700_v36 = vpop.f32.mrf.mxu0 }
 0x22d   : > { %v701_v45 = vadd.f32 %v700_v36, %v571_v17  ;;  %v849_v57 = vadd.f32 %v818_v31, %v681_v50  ;;  %v906_v63 = vadd.f32 %v881_v38, %v850_v52  ;;  %v936_v31 = vld [vmem:[%s5088_s5 + $0x8] sm:$0xff]  ;;  %v3187_v38 = vld [vmem:[%s5086_s3 + $0xc0] sm:$0xff]  ;;  %v3197_v50 = vld [vmem:[%s5086_s3 + $0x110] sm:$0xff] }
 0x22e   : > { %v3670_v33 = vpop.f32.mrf.mxu1  ;;  %3716 = vmatprep.mubr.msk.f32.mxu1 %vm450_vm1, %v3187_v38  ;;  %v3199_v52 = vld [vmem:[%s5086_s3 + $0x120] sm:$0xff] }
 0x22f   : > { %v852_v35 = vadd.f32 %v3670_v33, %v696_v32  ;;  %v905_v2 = vadd.f32 %v876_v60, %v849_v57  ;;  %v937_v32 = vld [vmem:[%s5088_s5 + $0x10] sm:$0xff]  ;;  %v938_v33 = vld [vmem:[%s5088_s5 + $0x18] sm:$0xff]  ;;  %v3223_v60 = vld [vmem:[%s5086_s3 + $0x140] sm:$0xff] }
 0x230   : > { %v828_v37 = vpop.f32.mrf.mxu1  ;;  %v3246_v57 = vld [vmem:[%s5087_s4 + $0x58] sm:$0xff] }
 0x231   : > { %v908_v40 = vadd.f32 %v891_v29, %v852_v35  ;;  %v851_v41 = vadd.f32 %v828_v37, %v691_v34  ;;  %v3195_v34 = vld [vmem:[%s5086_s3 + $0x100] sm:$0xff]  ;;  %v961_v35 = vpop.permute.xlu0 %960 }
 0x232   : > { %v3673_v44 = vpop.f32.mrf.mxu1 }
 0x233   : > { %v916_v47 = vmul.f32 0.5, %v908_v40  ;;  %v907_v48 = vadd.f32 %v886_v42, %v851_v41  ;;  %v854_v49 = vadd.f32 %v3673_v44, %v706_v39  ;;  %v956_v41 = vpop.permute.xlu1 %955 }
 0x234   : > { %v838_v51 = vpop.f32.mrf.mxu1 }
 0x235   : > { %v915_v53 = vmul.f32 0.5, %v907_v48  ;;  %v910_v54 = vadd.f32 %v901_v20, %v854_v49  ;;  %v853_v55 = vadd.f32 %v838_v51, %v701_v45  ;;  %3961 = vtanh.f32 %v916_v47  ;;  %v951_v36 = vpop.permute.xlu0 %950  ;;  %v3196_v49 = vld [vmem:[%s5086_s3 + $0x108] sm:$0xff]  ;;  %v3198_v51 = vld [vmem:[%s5086_s3 + $0x118] sm:$0xff] }
 0x237   : > { %v918_v58 = vmul.f32 0.5, %v910_v54  ;;  %v909_v59 = vadd.f32 %v896_v28, %v853_v55  ;;  %3963 = vtanh.f32 %v915_v53  ;;  %v946_v47 = vpop.permute.xlu1 %945  ;;  %v3249_v53 = vld [vmem:[%s5087_s4 + $0x70] sm:$0xff]  ;;  %v3250_v54 = vld [vmem:[%s5087_s4 + $0x78] sm:$0xff]  ;;  %v3200_v55 = vld [vmem:[%s5086_s3 + $0x128] sm:$0xff] }
 0x239   : > { %3965 = vtanh.f32 %v918_v58  ;;  %v917_v0 = vmul.f32 0.5, %v909_v59  ;;  %v3248_v58 = vld [vmem:[%s5087_s4 + $0x68] sm:$0xff]  ;;  %v3202_v59 = vld [vmem:[%s5086_s3 + $0x138] sm:$0xff] }
 0x23b   : > { %3967 = vtanh.f32 %v917_v0  ;;  %v3244_v0 = vld [vmem:[%s5087_s4 + $0x48] sm:$0xff] }
 0x23c   : > { %3969 = vtanh.f32 %v906_v63  ;;  %v3243_v63 = vld [vmem:[%s5087_s4 + $0x40] sm:$0xff] }
 0x23d   : > { %3971 = vtanh.f32 %v905_v2  ;;  %v3258_v2 = vld [vmem:[%s5089_s6 + $0x38] sm:$0xff] }
 0x23e   : > { %3973 = vtanh.f32 %v904_v4  ;;  %v3256_v4 = vld [vmem:[%s5089_s6 + $0x28] sm:$0xff] }
 0x23f   : > { %3975 = vtanh.f32 %v903_v8 }
 0x242   : > { %v3962_v6 = vpop.eup %3961 }
 0x243   : > { %v924_v11 = vadd.f32 1.0, %v3962_v6 }
 0x244   : > { %v3964_v9 = vpop.eup %3963 }
 0x245   : > { %v923_v15 = vadd.f32 1.0, %v3964_v9  ;;  %v928_v21 = vmul.f32 0.5, %v924_v11  ;;  %v3189_v11 = vld [vmem:[%s5086_s3 + $0xd0] sm:$0xff] }
 0x246   : > { %v3966_v10 = vpop.eup %3965 }
 0x247   : > { %v926_v7 = vadd.f32 1.0, %v3966_v10  ;;  %v927_v26 = vmul.f32 0.5, %v923_v15 }
 0x248   : > { %v3968_v12 = vpop.eup %3967 }
 0x249   : > { %v930_v13 = vmul.f32 0.5, %v926_v7  ;;  %v925_v14 = vadd.f32 1.0, %v3968_v12  ;;  %v3970_v17 = vpop.eup %3969  ;;  %v3188_v7 = vld [vmem:[%s5086_s3 + $0xc8] sm:$0xff] }
 0x24a   : > { %v3972_v23 = vpop.eup %3971 }
 0x24b   : > { %v934_v18 = vmul.f32 %v3970_v17, %v930_v13  ;;  %v929_v20 = vmul.f32 0.5, %v925_v14  ;;  %v3974_v27 = vpop.eup %3973  ;;  %v3190_v13 = vld [vmem:[%s5086_s3 + $0xd8] sm:$0xff]  ;;  %v3191_v14 = vld [vmem:[%s5086_s3 + $0xe0] sm:$0xff] }
 0x24c   : > { %v932_v28 = vmul.f32 %v3974_v27, %v928_v21  ;;  %v3976_v29 = vpop.eup %3975  ;;  %v3193_v21 = vld [vmem:[%s5086_s3 + $0xf0] sm:$0xff]  ;;  %v3227_v27 = vld [vmem:[%s5086_s3 + $0x160] sm:$0xff] }
 0x24d   : > { %3674 = vmatprep.subr.mxu0 %v934_v18  ;;  %v933_v25 = vmul.f32 %v3972_v23, %v929_v20  ;;  %v931_v30 = vmul.f32 %v3976_v29, %v927_v26  ;;  %v3224_v20 = vld [vmem:[%s5086_s3 + $0x148] sm:$0xff]  ;;  %v3225_v23 = vld [vmem:[%s5086_s3 + $0x150] sm:$0xff]  ;;  %v3226_v26 = vld [vmem:[%s5086_s3 + $0x158] sm:$0xff] }
 0x24e   : > { %3675 = vmatpush3.msra.mxu0 %v934_v18  ;;  %v3192_v18 = vld [vmem:[%s5086_s3 + $0xe8] sm:$0xff]  ;;  %v3229_v29 = vld [vmem:[%s5086_s3 + $0x170] sm:$0xff] }
 0x24f   : > { %3676 = vmatprep.subr.mxu0 %v933_v25 }
 0x250   : > { %3677 = vmatpush3.msra.mxu0 %v933_v25  ;;  %v3194_v25 = vld [vmem:[%s5086_s3 + $0xf8] sm:$0xff] }
 0x251   : > { %3678 = vmatprep.subr.mxu0 %v932_v28 }
 0x252   : > { %3679 = vmatpush3.msra.mxu0 %v932_v28  ;;  %v3228_v28 = vld [vmem:[%s5086_s3 + $0x168] sm:$0xff] }
 0x253   : > { %3680 = vmatprep.subr.mxu0 %v931_v30 }
 0x254   : > { %3681 = vmatpush3.msra.mxu0 %v931_v30  ;;  %v3230_v30 = vld [vmem:[%s5086_s3 + $0x178] sm:$0xff] }
 0x255   : > { %3683 = vmatmul.mubr.msk.f32.vlgmr.msra.gmra.mxu0 %vm450_vm1, %v936_v31  ;;  %v3251_v31 = vld [vmem:[%s5088_s5 + $0x20] sm:$0xff] }
 0x256   : > { %3685 = vmatprep.mubr.msk.f32.mxu0 %vm450_vm1, %v937_v32 }
 0x259   : > { %3686 = vmatmul.mubr.msk.f32.gmra.mxu0 %vm450_vm1, %v938_v33 }
 0x25a   : > { %3696 = vmatprep.mubr.msk.f32.mxu0 %vm450_vm1, %v3195_v34 }
 0x315   : > { %v3684_v37 = vpop.f32.mrf.mxu0 }
 0x316   : > { %v4434_v39 = vadd.f32 %v3684_v37, %v951_v36 }
 0x317   : > { %v1041_v40 = vpop.f32.mrf.mxu0 }
 0x318   : > { %1067 = vrot.lane.b32.xlu1 %v4434_v39, %s4090_s22  ;;  %v4448_v48 = vadd.f32 %v1041_v40, %v946_v47 }
 0x319   : > { %v3687_v42 = vpop.f32.mrf.mxu0 }
 0x31a   : > { %v4438_v43 = vadd.f32 %v3687_v42, %v961_v35 }
 0x31b   : > { %v1051_v44 = vpop.f32.mrf.mxu0 }
 0x31c   : > { %v4440_v45 = vadd.f32 %v1051_v44, %v956_v41  ;;  %1071 = vrot.lane.b32.xlu0 %v4438_v43, %s4090_s22  ;;  %3688 = vmatprep.subr.mxu0 %v4438_v43 }
 0x31d   : > { %3689 = vmatpush3.msra.mxu0 %v4438_v43 }
 0x31e   : > { %1069 = vrot.lane.b32.xlu1 %v4440_v45, %s4090_s22  ;;  %3690 = vmatprep.subr.mxu0 %v4440_v45 }
 0x31f   : > { %3691 = vmatpush3.msra.mxu0 %v4440_v45 }
 0x320   : > { %1084 = vrot.lane.b32.xlu0 %v4438_v43, %s4091_s23  ;;  %3692 = vmatprep.subr.mxu0 %v4434_v39 }
 0x321   : > { %3693 = vmatpush3.msra.mxu0 %v4434_v39 }
 0x322   : > { %1065 = vrot.lane.b32.xlu1 %v4448_v48, %s4090_s22  ;;  %3694 = vmatprep.subr.mxu0 %v4448_v48 }
 0x323   : > { %3695 = vmatpush3.msra.mxu0 %v4448_v48 }
 0x324   : > { %1082 = vrot.lane.b32.xlu0 %v4440_v45, %s4091_s23  ;;  %3697 = vmatmul.mubr.msk.f32.vlgmr.msra.gmra.mxu0 %vm450_vm1, %v3196_v49 }
 0x325   : > { %3699 = vmatprep.mubr.msk.f32.mxu0 %vm450_vm1, %v3197_v50 }
 0x326   : > { %1078 = vrot.lane.b32.xlu1 %v4448_v48, %s4091_s23 }
 0x328   : > { %1080 = vrot.lane.b32.xlu0 %v4434_v39, %s4091_s23  ;;  %3700 = vmatmul.mubr.msk.f32.gmra.mxu0 %vm450_vm1, %v3198_v51  ;;  %s4029_s23 = sshll.u32 %s4096_s15, 4  ;;  %s4030_s23 = int_to_ptr.vmem [resolvable:$false] %s4029_s23 }
 0x329   : > { %3702 = vmatprep.mubr.msk.f32.mxu0 %vm450_vm1, %v3199_v52  ;;  %s4031_s16 = scalar_lea.vmem %s4030_s23, 1024 }
 0x32a   : > { %1553 = vperm.xlu1 %3960, %v3249_v53  }
 0x32c   : > { %1558 = vperm.xlu0 %3959, %v3250_v54   ;;  %3703 = vmatmul.mubr.msk.f32.gmra.mxu0 %vm450_vm1, %v3200_v55 }
 0x32d   : > { %3705 = vmatprep.mubr.msk.f32.mxu0 %vm450_vm1, %v3201_v56 }
 0x32e   : > { %1538 = vperm.xlu1 %3960, %v3246_v57  }
 0x330   : > { %1548 = vperm.xlu0 %3959, %v3248_v58   ;;  %3706 = vmatmul.mubr.msk.f32.gmra.mxu0 %vm450_vm1, %v3202_v59 }
 0x331   : > { %3736 = vmatprep.mubr.msk.f32.mxu0 %vm450_vm1, %v3223_v60 }
 0x332   : > { %1533 = vperm.xlu1 %3960, %v3245_v61  }
 0x334   : > { %1543 = vperm.xlu0 %3959, %v3247_v62  }
 0x336   : > { %1523 = vperm.xlu1 %3960, %v3243_v63  }
 0x338   : > { %1528 = vperm.xlu0 %3959, %v3244_v0  }
 0x33a   : > { %1615 = vperm.xlu1 %3960, %v3257_v1  }
 0x33c   : > { %1620 = vperm.xlu0 %3959, %v3258_v2  }
 0x33e   : > { %1605 = vperm.xlu1 %3960, %v3255_v3  }
 0x340   : > { %1610 = vperm.xlu0 %3959, %v3256_v4  }
 0x38a   : > { %v1068_v5 = vpop.permute.xlu1 %1067 }
 0x38e   : > { %v1072_v8 = vpop.permute.xlu0 %1071 }
 0x38f   : > { %3708 = vmatprep.subr.msk.mxu1 %vm1064_vm4, %v1072_v8 }
 0x390   : > { %3709 = vmatpush3.msk.msra.mxu1 %vm1064_vm4, %v1072_v8  ;;  %v1070_v6 = vpop.permute.xlu1 %1069 }
 0x391   : > { %3710 = vmatprep.subr.msk.mxu1 %vm1064_vm4, %v1070_v6 }
 0x392   : > { %v1085_v9 = vpop.permute.xlu0 %1084  ;;  %3711 = vmatpush3.msk.msra.mxu1 %vm1064_vm4, %v1070_v6 }
 0x393   : > { %3712 = vmatprep.subr.msk.mxu1 %vm1064_vm4, %v1068_v5  ;;  %3728 = vmatprep.subr.msk.mxu0 %vm1077_vm5, %v1085_v9 }
 0x394   : > { %3713 = vmatpush3.msk.msra.mxu1 %vm1064_vm4, %v1068_v5  ;;  %v1066_v10 = vpop.permute.xlu1 %1065  ;;  %3729 = vmatpush3.msk.msra.mxu0 %vm1077_vm5, %v1085_v9 }
 0x395   : > { %3714 = vmatprep.subr.msk.mxu1 %vm1064_vm4, %v1066_v10 }
 0x396   : > { %v1083_v12 = vpop.permute.xlu0 %1082  ;;  %3715 = vmatpush3.msk.msra.mxu1 %vm1064_vm4, %v1066_v10 }
 0x397   : > { %3717 = vmatmul.mubr.msk.f32.vlgmr.msra.gmra.mxu1 %vm450_vm1, %v3188_v7  ;;  %3730 = vmatprep.subr.msk.mxu0 %vm1077_vm5, %v1083_v12 }
 0x398   : > { %3731 = vmatpush3.msk.msra.mxu0 %vm1077_vm5, %v1083_v12  ;;  %3719 = vmatprep.mubr.msk.f32.mxu1 %vm450_vm1, %v3189_v11  ;;  %v1079_v17 = vpop.permute.xlu1 %1078 }
 0x39a   : > { %v1081_v15 = vpop.permute.xlu0 %1080 }
 0x39b   : > { %3720 = vmatmul.mubr.msk.f32.gmra.mxu1 %vm450_vm1, %v3190_v13  ;;  %3732 = vmatprep.subr.msk.mxu0 %vm1077_vm5, %v1081_v15 }
 0x39c   : > { %3733 = vmatpush3.msk.msra.mxu0 %vm1077_vm5, %v1081_v15  ;;  %3722 = vmatprep.mubr.msk.f32.mxu1 %vm450_vm1, %v3191_v14 }
 0x39d   : > { %3734 = vmatprep.subr.msk.mxu0 %vm1077_vm5, %v1079_v17 }
 0x39e   : > { %3735 = vmatpush3.msk.msra.mxu0 %vm1077_vm5, %v1079_v17 }
 0x39f   : > { %3723 = vmatmul.mubr.msk.f32.gmra.mxu1 %vm450_vm1, %v3192_v18  ;;  %3737 = vmatmul.mubr.msk.f32.vlgmr.msra.gmra.mxu0 %vm450_vm1, %v3224_v20 }
 0x3a0   : > { %3725 = vmatprep.mubr.msk.f32.mxu1 %vm450_vm1, %v3193_v21  ;;  %3739 = vmatprep.mubr.msk.f32.mxu0 %vm450_vm1, %v3225_v23 }
 0x3a3   : > { %3726 = vmatmul.mubr.msk.f32.gmra.mxu1 %vm450_vm1, %v3194_v25  ;;  %3740 = vmatmul.mubr.msk.f32.gmra.mxu0 %vm450_vm1, %v3226_v26 }
 0x3a4   : > { %3742 = vmatprep.mubr.msk.f32.mxu0 %vm450_vm1, %v3227_v27  ;;  %3756 = vmatprep.mubr.msk.f32.mxu1 %vm450_vm1, %v3251_v31 }
 0x3a5   : > { %v1554_v55 = vpop.permute.xlu1 %1553 }
 0x3a7   : > { %3743 = vmatmul.mubr.msk.f32.gmra.mxu0 %vm450_vm1, %v3228_v28  ;;  %v1559_v49 = vpop.permute.xlu0 %1558 }
 0x3a8   : > { %3745 = vmatprep.mubr.msk.f32.mxu0 %vm450_vm1, %v3229_v29 }
 0x3a9   : > { %v1539_v1 = vpop.permute.xlu1 %1538 }
 0x3ab   : > { %3746 = vmatmul.mubr.msk.f32.gmra.mxu0 %vm450_vm1, %v3230_v30  ;;  %v1549_v56 = vpop.permute.xlu0 %1548 }
 0x3ad   : > { %v1534_v26 = vpop.permute.xlu1 %1533 }
 0x3af   : > { %v1544_v5 = vpop.permute.xlu0 %1543 }
 0x3e4   : > { %v3698_v32 = vpop.f32.mrf.mxu0 }
 0x3e6   : > { %v1198_v33 = vpop.f32.mrf.mxu0 }
 0x3e8   : > { %v3701_v34 = vpop.f32.mrf.mxu0 }
 0x3ea   : > { %v1208_v35 = vpop.f32.mrf.mxu0 }
 0x3ec   : > { %v3704_v36 = vpop.f32.mrf.mxu0 }
 0x3ee   : > { %v1218_v37 = vpop.f32.mrf.mxu0 }
 0x3f0   : > { %v3707_v40 = vpop.f32.mrf.mxu0 }
 0x3f2   : > { %v1228_v44 = vpop.f32.mrf.mxu0 }
 0x457   : > { %v3718_v38 = vpop.f32.mrf.mxu1 }
 0x458   : > { %v1333_v20 = vadd.f32 %v3718_v38, %v3698_v32 }
 0x459   : > { %v1327_v41 = vpop.f32.mrf.mxu1 }
 0x45a   : > { %v1328_v27 = vadd.f32 %v1327_v41, %v1198_v33 }
 0x45b   : > { %v3721_v42 = vpop.f32.mrf.mxu1 }
 0x45c   : > { %v1343_v8 = vadd.f32 %v3721_v42, %v3701_v34 }
 0x45d   : > { %v1337_v47 = vpop.f32.mrf.mxu1 }
 0x45e   : > { %v1338_v12 = vadd.f32 %v1337_v47, %v1208_v35  ;;  %v1529_v35 = vpop.permute.xlu0 %1528 }
 0x45f   : > { %v3724_v50 = vpop.f32.mrf.mxu1  ;;  %v3738_v51 = vpop.f32.mrf.mxu0 }
 0x460   : > { %v1353_v59 = vadd.f32 %v3724_v50, %v3704_v36  ;;  %v1505_v28 = vadd.f32 %v3738_v51, %v1333_v20 }
 0x461   : > { %v1347_v52 = vpop.f32.mrf.mxu1  ;;  %v1465_v53 = vpop.f32.mrf.mxu0 }
 0x462   : > { %v1348_v61 = vadd.f32 %v1347_v52, %v1218_v37  ;;  %v1504_v31 = vadd.f32 %v1465_v53, %v1328_v27  ;;  %v1562_v36 = vadd.f32 %v1529_v35, %v1505_v28  ;;  %v1524_v37 = vpop.permute.xlu1 %1523  ;;  %v3322_v27 = vld [vmem:[%s5087_s4 + $0x98] sm:$0xff]  ;;  %v3324_v28 = vld [vmem:[%s5087_s4 + $0xa8] sm:$0xff]  ;;  %v3319_v35 = vld [vmem:[%s5087_s4 + $0x80] sm:$0xff] }
 0x463   : > { %v3741_v54 = vpop.f32.mrf.mxu0  ;;  %v3727_v57 = vpop.f32.mrf.mxu1 }
 0x464   : > { %v1363_v2 = vadd.f32 %v3727_v57, %v3707_v40  ;;  %v1507_v14 = vadd.f32 %v3741_v54, %v1343_v8  ;;  %v1561_v40 = vadd.f32 %v1524_v37, %v1504_v31  ;;  %v3263_v8 = vld [vmem:[%s5086_s3 + $0x180] sm:$0xff]  ;;  %v3321_v31 = vld [vmem:[%s5087_s4 + $0x90] sm:$0xff] }
 0x465   : > { %v1475_v58 = vpop.f32.mrf.mxu0  ;;  %v1357_v63 = vpop.f32.mrf.mxu1  ;;  %3790 = vmatprep.mubr.msk.f32.mxu0 %vm450_vm1, %v3263_v8  ;;  %v3333_v37 = vld [vmem:[%s5089_s6 + $0x50] sm:$0xff] }
 0x466   : > { %v1358_v9 = vadd.f32 %v1357_v63, %v1228_v44  ;;  %v1506_v21 = vadd.f32 %v1475_v58, %v1338_v12  ;;  %v1564_v29 = vadd.f32 %v1539_v1, %v1507_v14  ;;  %v3253_v63 = vld [vmem:[%s5088_s5 + $0x30] sm:$0xff]  ;;  %v3271_v1 = vld [vmem:[%s5086_s3 + $0x1c0] sm:$0xff] }
 0x467   : > { %v3744_v60 = vpop.f32.mrf.mxu0 }
 0x468   : > { %v1509_v62 = vadd.f32 %v3744_v60, %v1353_v59  ;;  %v1563_v34 = vadd.f32 %v1534_v26, %v1506_v21  ;;  %v3277_v26 = vld [vmem:[%s5086_s3 + $0x1f0] sm:$0xff] }
 0x469   : > { %v1485_v0 = vpop.f32.mrf.mxu0 }
 0x46a   : > { %v1566_v3 = vadd.f32 %v1549_v56, %v1509_v62  ;;  %v1508_v4 = vadd.f32 %v1485_v0, %v1348_v61  ;;  %v3252_v62 = vld [vmem:[%s5088_s5 + $0x28] sm:$0xff]  ;;  %v3254_v0 = vld [vmem:[%s5088_s5 + $0x38] sm:$0xff] }
 0x46b   : > { %v3747_v6 = vpop.f32.mrf.mxu0 }
 0x46c   : > { %v1574_v10 = vmul.f32 0.5, %v1566_v3  ;;  %v1565_v7 = vadd.f32 %v1544_v5, %v1508_v4  ;;  %v1511_v11 = vadd.f32 %v3747_v6, %v1363_v2  ;;  %v1621_v2 = vpop.permute.xlu0 %1620  ;;  %v1616_v3 = vpop.permute.xlu1 %1615 }
 0x46d   : > { %v1495_v13 = vpop.f32.mrf.mxu0 }
 0x46e   : > { %v1573_v15 = vmul.f32 0.5, %v1565_v7  ;;  %v1568_v17 = vadd.f32 %v1559_v49, %v1511_v11  ;;  %v1510_v18 = vadd.f32 %v1495_v13, %v1358_v9  ;;  %3977 = vtanh.f32 %v1574_v10 }
 0x46f   : > { %v1061_v9 = vadd.f32 %v4434_v39, %v4226_v16  ;;  %v1060_v13 = vadd.f32 %v4448_v48, %v4240_v24  ;;  %v1062_v39 = vadd.f32 %v4440_v45, %v4232_v22  ;;  %v3273_v22 = vld [vmem:[%s5086_s3 + $0x1d0] sm:$0xff]  ;;  %v3275_v45 = vld [vmem:[%s5086_s3 + $0x1e0] sm:$0xff] }
 0x470   : > { %v1576_v23 = vmul.f32 0.5, %v1568_v17  ;;  %v1567_v25 = vadd.f32 %v1554_v55, %v1510_v18  ;;  %3979 = vtanh.f32 %v1573_v15  ;;  %v1611_v4 = vpop.permute.xlu0 %1610  ;;  %v1606_v10 = vpop.permute.xlu1 %1605  ;;  %v1063_v18 = vadd.f32 %v4438_v43, %v4230_v19  ;;  %v3272_v19 = vld [vmem:[%s5086_s3 + $0x1c8] sm:$0xff]  ;;  %v3274_v43 = vld [vmem:[%s5086_s3 + $0x1d8] sm:$0xff]  ;;  %v3325_v48 = vld [vmem:[%s5087_s4 + $0xb0] sm:$0xff] }
 0x472   : > { %3981 = vtanh.f32 %v1576_v23  ;;  %v1575_v30 = vmul.f32 0.5, %v1567_v25  ;;  %v3326_v23 = vld [vmem:[%s5087_s4 + $0xb8] sm:$0xff]  ;;  %v3276_v25 = vld [vmem:[%s5086_s3 + $0x1e8] sm:$0xff] }
 0x474   : > { %3983 = vtanh.f32 %v1575_v30  ;;  %v3299_v30 = vld [vmem:[%s5086_s3 + $0x200] sm:$0xff] }
 0x475   : > { %3985 = vtanh.f32 %v1564_v29  ;;  %v3278_v29 = vld [vmem:[%s5086_s3 + $0x1f8] sm:$0xff] }
 0x476   : > { %3987 = vtanh.f32 %v1563_v34  ;;  %v3323_v34 = vld [vmem:[%s5087_s4 + $0xa0] sm:$0xff] }
 0x477   : > { %3989 = vtanh.f32 %v1562_v36  ;;  %v3320_v36 = vld [vmem:[%s5087_s4 + $0x88] sm:$0xff] }
 0x478   : > { %3991 = vtanh.f32 %v1561_v40  ;;  %v3334_v40 = vld [vmem:[%s5089_s6 + $0x58] sm:$0xff] }
 0x47b   : > { %v3978_v32 = vpop.eup %3977 }
 0x47c   : > { %v1582_v41 = vadd.f32 1.0, %v3978_v32  ;;  %v3331_v32 = vld [vmem:[%s5089_s6 + $0x40] sm:$0xff] }
 0x47d   : > { %v3980_v38 = vpop.eup %3979 }
 0x47e   : > { %v1581_v50 = vadd.f32 1.0, %v3980_v38  ;;  %v1586_v54 = vmul.f32 0.5, %v1582_v41  ;;  %v3332_v38 = vld [vmem:[%s5089_s6 + $0x48] sm:$0xff] }
 0x47f   : > { %v3982_v42 = vpop.eup %3981 }
 0x480   : > { %v1584_v33 = vadd.f32 1.0, %v3982_v42  ;;  %v1585_v57 = vmul.f32 0.5, %v1581_v50  ;;  %v3265_v50 = vld [vmem:[%s5086_s3 + $0x190] sm:$0xff] }
 0x481   : > { %v3984_v44 = vpop.eup %3983 }
 0x482   : > { %v1588_v47 = vmul.f32 0.5, %v1584_v33  ;;  %v1583_v49 = vadd.f32 1.0, %v3984_v44  ;;  %v3986_v51 = vpop.eup %3985 }
 0x483   : > { %v3988_v55 = vpop.eup %3987 }
 0x484   : > { %v1592_v52 = vmul.f32 %v3986_v51, %v1588_v47  ;;  %v1587_v53 = vmul.f32 0.5, %v1583_v49  ;;  %v3990_v58 = vpop.eup %3989  ;;  %v3264_v49 = vld [vmem:[%s5086_s3 + $0x188] sm:$0xff] }
 0x485   : > { %v1590_v59 = vmul.f32 %v3990_v58, %v1586_v54  ;;  %v3992_v60 = vpop.eup %3991  ;;  %v3269_v58 = vld [vmem:[%s5086_s3 + $0x1b0] sm:$0xff] }
 0x486   : > { %3748 = vmatprep.subr.mxu1 %v1592_v52  ;;  %v1591_v56 = vmul.f32 %v3988_v55, %v1587_v53  ;;  %v1589_v61 = vmul.f32 %v3992_v60, %v1585_v57  ;;  %v3267_v53 = vld [vmem:[%s5086_s3 + $0x1a0] sm:$0xff]  ;;  %v3300_v57 = vld [vmem:[%s5086_s3 + $0x208] sm:$0xff]  ;;  %v3270_v60 = vld [vmem:[%s5086_s3 + $0x1b8] sm:$0xff] }
 0x487   : > { %3749 = vmatpush3.msra.mxu1 %v1592_v52  ;;  %v3266_v52 = vld [vmem:[%s5086_s3 + $0x198] sm:$0xff] }
 0x488   : > { %3750 = vmatprep.subr.mxu1 %v1591_v56 }
 0x489   : > { %3751 = vmatpush3.msra.mxu1 %v1591_v56  ;;  %v3268_v56 = vld [vmem:[%s5086_s3 + $0x1a8] sm:$0xff] }
 0x48a   : > { %3752 = vmatprep.subr.mxu1 %v1590_v59 }
 0x48b   : > { %3753 = vmatpush3.msra.mxu1 %v1590_v59  ;;  %v3301_v59 = vld [vmem:[%s5086_s3 + $0x210] sm:$0xff] }
 0x48c   : > { %3754 = vmatprep.subr.mxu1 %v1589_v61 }
 0x48d   : > { %3755 = vmatpush3.msra.mxu1 %v1589_v61  ;;  %v3302_v61 = vld [vmem:[%s5086_s3 + $0x218] sm:$0xff] }
 0x48e   : > { %3757 = vmatmul.mubr.msk.f32.vlgmr.msra.gmra.mxu1 %vm450_vm1, %v3252_v62  ;;  %v3303_v62 = vld [vmem:[%s5086_s3 + $0x220] sm:$0xff] }
 0x48f   : > { %3759 = vmatprep.mubr.msk.f32.mxu1 %vm450_vm1, %v3253_v63  ;;  %v3304_v63 = vld [vmem:[%s5086_s3 + $0x228] sm:$0xff] }
 0x492   : > { %3760 = vmatmul.mubr.msk.f32.gmra.mxu1 %vm450_vm1, %v3254_v0  ;;  %v3305_v0 = vld [vmem:[%s5086_s3 + $0x230] sm:$0xff] }
 0x493   : > { %3770 = vmatprep.mubr.msk.f32.mxu1 %vm450_vm1, %v3271_v1  ;;  %v3306_v1 = vld [vmem:[%s5086_s3 + $0x238] sm:$0xff] }
 0x54e   : > { %v3758_v5 = vpop.f32.mrf.mxu1 }
 0x54f   : > { %v1707_v6 = vadd.f32 %v3758_v5, %v1611_v4 }
 0x550   : > { %v1701_v7 = vpop.f32.mrf.mxu1 }
 0x551   : > { %v1702_v11 = vadd.f32 %v1701_v7, %v1606_v10  ;;  %1727 = vrot.lane.b32.xlu1 %v1707_v6, %s4092_s20  ;;  %v4643_v12 = vadd.f32 %v1707_v6, %v1061_v9 }
 0x552   : > { %v3761_v14 = vpop.f32.mrf.mxu1 }
 0x553   : > { %v1717_v15 = vadd.f32 %v3761_v14, %v1621_v2  ;;  %v4647_v17 = vadd.f32 %v1702_v11, %v1060_v13  ;;  %v3327_v2 = vld [vmem:[%s5088_s5 + $0x40] sm:$0xff] }
 0x554   : > { %v1711_v20 = vpop.f32.mrf.mxu1 }
 0x555   : > { %v1712_v21 = vadd.f32 %v1711_v20, %v1616_v3  ;;  %1731 = vrot.lane.b32.xlu0 %v1717_v15, %s4092_s20  ;;  %3762 = vmatprep.subr.mxu1 %v1717_v15  ;;  %v4651_v16 = vadd.f32 %v1717_v15, %v1063_v18 }
 0x556   : > { %3763 = vmatpush3.msra.mxu1 %v1717_v15 }
 0x557   : > { %1729 = vrot.lane.b32.xlu1 %v1712_v21, %s4092_s20  ;;  %3764 = vmatprep.subr.mxu1 %v1712_v21  ;;  %v4655_v24 = vadd.f32 %v1712_v21, %v1062_v39 }
 0x558   : > { %3765 = vmatpush3.msra.mxu1 %v1712_v21 }
 0x559   : > { %1744 = vrot.lane.b32.xlu0 %v1717_v15, %s4093_s21  ;;  %3766 = vmatprep.subr.mxu1 %v1707_v6 }
 0x55a   : > { %3767 = vmatpush3.msra.mxu1 %v1707_v6 }
 0x55b   : > { %1725 = vrot.lane.b32.xlu1 %v1702_v11, %s4092_s20  ;;  %3768 = vmatprep.subr.mxu1 %v1702_v11  ;;  %s3128_s20 = sshll.u32 %s269_s17, 5 }
 0x55c   : > { %3769 = vmatpush3.msra.mxu1 %v1702_v11  ;;  %s271_s22 = scalar_lea.vmem [#allocation2], %s3128_s20 }
 0x55d   : > { %1742 = vrot.lane.b32.xlu0 %v1712_v21, %s4093_s21  ;;  %3771 = vmatmul.mubr.msk.f32.vlgmr.msra.gmra.mxu1 %vm450_vm1, %v3272_v19  ;;  %s3062_s29 = sshll.u32 %s271_s22, 4  ;;  %s5034_s29 = int_to_ptr.vmem [resolvable:$true] %s3062_s29 }
 0x55e   : > { %3773 = vmatprep.mubr.msk.f32.mxu1 %vm450_vm1, %v3273_v22  ;;  %s4025_s28 = scalar_lea.vmem %s5034_s29, 512  ;;  %p4032_p0 = scmp.lt.s32.totalorder %s5034_s29, %s4030_s23 }
 0x55f   : > { %1738 = vrot.lane.b32.xlu1 %v1702_v11, %s4093_s21  ;;  %p4026_p11 = scmp.ne.s32.totalorder %s5034_s29, %s4025_s28  ;;  %p4033_p1 = scmp.lt.s32.totalorder %s4031_s16, %s4025_s28 }
 0x561   : > { %1740 = vrot.lane.b32.xlu0 %v1707_v6, %s4093_s21  ;;  %3774 = vmatmul.mubr.msk.f32.gmra.mxu1 %vm450_vm1, %v3274_v43  ;;  %s5042_s21 = scalar_lea.sflag [#allocation3], %s269_s17  ;;  %p4027_p12 = pnand %p4026_p11, %p4176_p5 }
 0x562   : > { %3776 = vmatprep.mubr.msk.f32.mxu1 %vm450_vm1, %v3275_v45  ;;  %p4034_p2 = por %p4033_p1, %p4032_p0 }
 0x563   : > { %2213 = vperm.xlu1 %3960, %v3325_v48   ;;  %p4028_p13 = pneg %p4027_p12 }
 0x565   : > { %2218 = vperm.xlu0 %3959, %v3326_v23   ;;  %3777 = vmatmul.mubr.msk.f32.gmra.mxu1 %vm450_vm1, %v3276_v25  ;;  %p4035_p3 = pnand %p4034_p2, %p4028_p13 }
 0x566   : > { %3779 = vmatprep.mubr.msk.f32.mxu1 %vm450_vm1, %v3277_v26 }
 0x567   : > { %2198 = vperm.xlu1 %3960, %v3322_v27  }
 0x569   : > { %2208 = vperm.xlu0 %3959, %v3324_v28   ;;  %3780 = vmatmul.mubr.msk.f32.gmra.mxu1 %vm450_vm1, %v3278_v29 }
 0x56a   : > { %3810 = vmatprep.mubr.msk.f32.mxu1 %vm450_vm1, %v3299_v30 }
 0x56b   : > { %2193 = vperm.xlu1 %3960, %v3321_v31  }
 0x56d   : > { %2203 = vperm.xlu0 %3959, %v3323_v34  }
 0x56f   : > { %2183 = vperm.xlu1 %3960, %v3319_v35  }
 0x571   : > { %2188 = vperm.xlu0 %3959, %v3320_v36  }
 0x573   : > { %2275 = vperm.xlu1 %3960, %v3333_v37  }
 0x575   : > { %2280 = vperm.xlu0 %3959, %v3334_v40  }
 0x577   : > { %2265 = vperm.xlu1 %3960, %v3331_v32  }
 0x579   : > { %2270 = vperm.xlu0 %3959, %v3332_v38  }
 0x5c3   : > { %v1728_v42 = vpop.permute.xlu1 %1727 }
 0x5c7   : > { %v1732_v33 = vpop.permute.xlu0 %1731 }
 0x5c8   : > { %3782 = vmatprep.subr.msk.mxu0 %vm1724_vm6, %v1732_v33 }
 0x5c9   : > { %3783 = vmatpush3.msk.msra.mxu0 %vm1724_vm6, %v1732_v33  ;;  %v1730_v41 = vpop.permute.xlu1 %1729 }
 0x5ca   : > { %3784 = vmatprep.subr.msk.mxu0 %vm1724_vm6, %v1730_v41 }
 0x5cb   : > { %v1745_v44 = vpop.permute.xlu0 %1744  ;;  %3785 = vmatpush3.msk.msra.mxu0 %vm1724_vm6, %v1730_v41 }
 0x5cc   : > { %3786 = vmatprep.subr.msk.mxu0 %vm1724_vm6, %v1728_v42  ;;  %3802 = vmatprep.subr.msk.mxu1 %vm1737_vm7, %v1745_v44 }
 0x5cd   : > { %3787 = vmatpush3.msk.msra.mxu0 %vm1724_vm6, %v1728_v42  ;;  %v1726_v47 = vpop.permute.xlu1 %1725  ;;  %3803 = vmatpush3.msk.msra.mxu1 %vm1737_vm7, %v1745_v44 }
 0x5ce   : > { %3788 = vmatprep.subr.msk.mxu0 %vm1724_vm6, %v1726_v47 }
 0x5cf   : > { %v1743_v51 = vpop.permute.xlu0 %1742  ;;  %3789 = vmatpush3.msk.msra.mxu0 %vm1724_vm6, %v1726_v47 }
 0x5d0   : > { %3791 = vmatmul.mubr.msk.f32.vlgmr.msra.gmra.mxu0 %vm450_vm1, %v3264_v49  ;;  %3804 = vmatprep.subr.msk.mxu1 %vm1737_vm7, %v1743_v51 }
 0x5d1   : > { %3805 = vmatpush3.msk.msra.mxu1 %vm1737_vm7, %v1743_v51  ;;  %3793 = vmatprep.mubr.msk.f32.mxu0 %vm450_vm1, %v3265_v50  ;;  %v1739_v55 = vpop.permute.xlu1 %1738 }
 0x5d3   : > { %v1741_v54 = vpop.permute.xlu0 %1740 }
 0x5d4   : > { %3794 = vmatmul.mubr.msk.f32.gmra.mxu0 %vm450_vm1, %v3266_v52  ;;  %3806 = vmatprep.subr.msk.mxu1 %vm1737_vm7, %v1741_v54 }
 0x5d5   : > { %3807 = vmatpush3.msk.msra.mxu1 %vm1737_vm7, %v1741_v54  ;;  %3796 = vmatprep.mubr.msk.f32.mxu0 %vm450_vm1, %v3267_v53 }
 0x5d6   : > { %3808 = vmatprep.subr.msk.mxu1 %vm1737_vm7, %v1739_v55 }
 0x5d7   : > { %3809 = vmatpush3.msk.msra.mxu1 %vm1737_vm7, %v1739_v55 }
 0x5d8   : > { %3797 = vmatmul.mubr.msk.f32.gmra.mxu0 %vm450_vm1, %v3268_v56  ;;  %3811 = vmatmul.mubr.msk.f32.vlgmr.msra.gmra.mxu1 %vm450_vm1, %v3300_v57 }
 0x5d9   : > { %3799 = vmatprep.mubr.msk.f32.mxu0 %vm450_vm1, %v3269_v58  ;;  %3813 = vmatprep.mubr.msk.f32.mxu1 %vm450_vm1, %v3301_v59 }
 0x5dc   : > { %3800 = vmatmul.mubr.msk.f32.gmra.mxu0 %vm450_vm1, %v3270_v60  ;;  %3814 = vmatmul.mubr.msk.f32.gmra.mxu1 %vm450_vm1, %v3302_v61 }
 0x5dd   : > { %3816 = vmatprep.mubr.msk.f32.mxu1 %vm450_vm1, %v3303_v62  ;;  %3830 = vmatprep.mubr.msk.f32.mxu0 %vm450_vm1, %v3327_v2 }
 0x5de   : > { %v2214_v43 = vpop.permute.xlu1 %2213 }
 0x5e0   : > { %3817 = vmatmul.mubr.msk.f32.gmra.mxu1 %vm450_vm1, %v3304_v63  ;;  %v2219_v18 = vpop.permute.xlu0 %2218 }
 0x5e1   : > { %3819 = vmatprep.mubr.msk.f32.mxu1 %vm450_vm1, %v3305_v0 }
 0x5e2   : > { %v2199_v31 = vpop.permute.xlu1 %2198 }
 0x5e4   : > { %3820 = vmatmul.mubr.msk.f32.gmra.mxu1 %vm450_vm1, %v3306_v1  ;;  %v2209_v45 = vpop.permute.xlu0 %2208 }
 0x5e6   : > { %v2194_v57 = vpop.permute.xlu1 %2193 }
 0x5e8   : > { %v2204_v37 = vpop.permute.xlu0 %2203 }
 0x5ea   : > { %v2184_v2 = vpop.permute.xlu1 %2183 }
 0x5ec   : > { %v2189_v0 = vpop.permute.xlu0 %2188 }
 0x61d   : > { %v3772_v3 = vpop.f32.mrf.mxu1 }
 0x61f   : > { %v1858_v4 = vpop.f32.mrf.mxu1 }
 0x621   : > { %v3775_v5 = vpop.f32.mrf.mxu1 }
 0x623   : > { %v1868_v8 = vpop.f32.mrf.mxu1 }
 0x625   : > { %v3778_v6 = vpop.f32.mrf.mxu1 }
 0x627   : > { %v1878_v9 = vpop.f32.mrf.mxu1 }
 0x629   : > { %v3781_v7 = vpop.f32.mrf.mxu1 }
 0x62b   : > { %v1888_v14 = vpop.f32.mrf.mxu1 }
 0x690   : > { %v3792_v10 = vpop.f32.mrf.mxu0 }
 0x691   : > { %v1993_v53 = vadd.f32 %v3792_v10, %v3772_v3 }
 0x692   : > { %v1987_v11 = vpop.f32.mrf.mxu0 }
 0x693   : > { %v1988_v58 = vadd.f32 %v1987_v11, %v1858_v4 }
 0x694   : > { %v3795_v13 = vpop.f32.mrf.mxu0 }
 0x695   : > { %v2003_v40 = vadd.f32 %v3795_v13, %v3775_v5 }
 0x696   : > { %v1997_v15 = vpop.f32.mrf.mxu0 }
 0x697   : > { %v1998_v44 = vadd.f32 %v1997_v15, %v1868_v8 }
 0x698   : > { %v3798_v20 = vpop.f32.mrf.mxu0  ;;  %v3812_v21 = vpop.f32.mrf.mxu1 }
 0x699   : > { %v2013_v25 = vadd.f32 %v3798_v20, %v3778_v6  ;;  %v2165_v59 = vadd.f32 %v3812_v21, %v1993_v53  ;;  %v3353_v53 = vld [vmem:[%s5086_s3 + $0x2b0] sm:$0xff] }
 0x69a   : > { %v2007_v39 = vpop.f32.mrf.mxu0  ;;  %v2125_v19 = vpop.f32.mrf.mxu1 }
 0x69b   : > { %v2008_v27 = vadd.f32 %v2007_v39, %v1878_v9  ;;  %v2164_v62 = vadd.f32 %v2125_v19, %v1988_v58  ;;  %v2222_v1 = vadd.f32 %v2189_v0, %v2165_v59  ;;  %v3397_v58 = vld [vmem:[%s5087_s4 + $0xd0] sm:$0xff]  ;;  %v3399_v59 = vld [vmem:[%s5087_s4 + $0xe0] sm:$0xff]  ;;  %v3410_v0 = vld [vmem:[%s5089_s6 + $0x78] sm:$0xff] }
 0x69c   : > { %v3815_v22 = vpop.f32.mrf.mxu1  ;;  %v3801_v48 = vpop.f32.mrf.mxu0 }
 0x69d   : > { %v2023_v34 = vadd.f32 %v3801_v48, %v3781_v7  ;;  %v2167_v49 = vadd.f32 %v3815_v22, %v2003_v40  ;;  %v2221_v5 = vadd.f32 %v2184_v2, %v2164_v62  ;;  %v3408_v62 = vld [vmem:[%s5089_s6 + $0x68] sm:$0xff] }
 0x69e   : > { %v2135_v23 = vpop.f32.mrf.mxu1  ;;  %v2017_v29 = vpop.f32.mrf.mxu0 }
 0x69f   : > { %v2018_v38 = vadd.f32 %v2017_v29, %v1888_v14  ;;  %v2166_v54 = vadd.f32 %v2135_v23, %v1998_v44  ;;  %v2224_v60 = vadd.f32 %v2199_v31, %v2167_v49  ;;  %v3328_v23 = vld [vmem:[%s5088_s5 + $0x48] sm:$0xff]  ;;  %v2276_v29 = vpop.permute.xlu1 %2275  ;;  %v3351_v49 = vld [vmem:[%s5086_s3 + $0x2a0] sm:$0xff] }
 0x6a0   : > { %v3818_v26 = vpop.f32.mrf.mxu1 }
 0x6a1   : > { %v2169_v28 = vadd.f32 %v3818_v26, %v2013_v25  ;;  %v2223_v63 = vadd.f32 %v2194_v57, %v2166_v54  ;;  %v3329_v25 = vld [vmem:[%s5088_s5 + $0x50] sm:$0xff]  ;;  %v3330_v26 = vld [vmem:[%s5088_s5 + $0x58] sm:$0xff]  ;;  %v3375_v57 = vld [vmem:[%s5086_s3 + $0x2c0] sm:$0xff] }
 0x6a2   : > { %v2145_v30 = vpop.f32.mrf.mxu1  ;;  %v3398_v54 = vld [vmem:[%s5087_s4 + $0xd8] sm:$0xff] }
 0x6a3   : > { %v2226_v35 = vadd.f32 %v2209_v45, %v2169_v28  ;;  %v2168_v36 = vadd.f32 %v2145_v30, %v2008_v27  ;;  %v3347_v27 = vld [vmem:[%s5086_s3 + $0x280] sm:$0xff]  ;;  %v2281_v28 = vpop.permute.xlu0 %2280 }
 0x6a4   : > { %v3821_v32 = vpop.f32.mrf.mxu1 }
 0x6a5   : > { %v2234_v42 = vmul.f32 0.5, %v2226_v35  ;;  %v2225_v33 = vadd.f32 %v2204_v37, %v2168_v36  ;;  %v2171_v41 = vadd.f32 %v3821_v32, %v2023_v34  ;;  %v3339_v34 = vld [vmem:[%s5086_s3 + $0x240] sm:$0xff]  ;;  %v2266_v36 = vpop.permute.xlu1 %2265 }
 0x6a6   : > { %v2155_v47 = vpop.f32.mrf.mxu1  ;;  %3864 = vmatprep.mubr.msk.f32.mxu1 %vm450_vm1, %v3339_v34 }
 0x6a7   : > { %v2233_v50 = vmul.f32 0.5, %v2225_v33  ;;  %v2228_v51 = vadd.f32 %v2219_v18, %v2171_v41  ;;  %v2170_v52 = vadd.f32 %v2155_v47, %v2018_v38  ;;  %3993 = vtanh.f32 %v2234_v42  ;;  %v2271_v30 = vpop.permute.xlu0 %2270 }
 0x6a9   : > { %v2236_v55 = vmul.f32 0.5, %v2228_v51  ;;  %v2227_v56 = vadd.f32 %v2214_v43, %v2170_v52  ;;  %3995 = vtanh.f32 %v2233_v50  ;;  %v3401_v50 = vld [vmem:[%s5087_s4 + $0xf0] sm:$0xff]  ;;  %v3402_v51 = vld [vmem:[%s5087_s4 + $0xf8] sm:$0xff]  ;;  %v3352_v52 = vld [vmem:[%s5086_s3 + $0x2a8] sm:$0xff] }
 0x6ab   : > { %3997 = vtanh.f32 %v2236_v55  ;;  %v2235_v61 = vmul.f32 0.5, %v2227_v56  ;;  %v3400_v55 = vld [vmem:[%s5087_s4 + $0xe8] sm:$0xff]  ;;  %v3354_v56 = vld [vmem:[%s5086_s3 + $0x2b8] sm:$0xff] }
 0x6ad   : > { %3999 = vtanh.f32 %v2235_v61  ;;  %v3396_v61 = vld [vmem:[%s5087_s4 + $0xc8] sm:$0xff] }
 0x6ae   : > { %4001 = vtanh.f32 %v2224_v60  ;;  %v3395_v60 = vld [vmem:[%s5087_s4 + $0xc0] sm:$0xff] }
 0x6af   : > { %4003 = vtanh.f32 %v2223_v63  ;;  %v3407_v63 = vld [vmem:[%s5089_s6 + $0x60] sm:$0xff] }
 0x6b0   : > { %4005 = vtanh.f32 %v2222_v1  ;;  %v3409_v1 = vld [vmem:[%s5089_s6 + $0x70] sm:$0xff] }
 0x6b1   : > { %4007 = vtanh.f32 %v2221_v5 }
 0x6b4   : > { %v3994_v3 = vpop.eup %3993 }
 0x6b5   : > { %v2242_v9 = vadd.f32 1.0, %v3994_v3 }
 0x6b6   : > { %v3996_v8 = vpop.eup %3995 }
 0x6b7   : > { %v2241_v13 = vadd.f32 1.0, %v3996_v8  ;;  %v2246_v20 = vmul.f32 0.5, %v2242_v9  ;;  %v3341_v9 = vld [vmem:[%s5086_s3 + $0x250] sm:$0xff] }
 0x6b8   : > { %v3998_v6 = vpop.eup %3997 }
 0x6b9   : > { %v2244_v4 = vadd.f32 1.0, %v3998_v6  ;;  %v2245_v19 = vmul.f32 0.5, %v2241_v13 }
 0x6ba   : > { %v4000_v10 = vpop.eup %3999 }
 0x6bb   : > { %v2248_v7 = vmul.f32 0.5, %v2244_v4  ;;  %v2243_v11 = vadd.f32 1.0, %v4000_v10  ;;  %v4002_v14 = vpop.eup %4001  ;;  %v3340_v4 = vld [vmem:[%s5086_s3 + $0x248] sm:$0xff] }
 0x6bc   : > { %v4004_v21 = vpop.eup %4003 }
 0x6bd   : > { %v2252_v15 = vmul.f32 %v4002_v14, %v2248_v7  ;;  %v2247_v18 = vmul.f32 0.5, %v2243_v11  ;;  %v4006_v22 = vpop.eup %4005  ;;  %v3342_v7 = vld [vmem:[%s5086_s3 + $0x258] sm:$0xff]  ;;  %v3343_v11 = vld [vmem:[%s5086_s3 + $0x260] sm:$0xff] }
 0x6be   : > { %v2250_v43 = vmul.f32 %v4006_v22, %v2246_v20  ;;  %v4008_v45 = vpop.eup %4007  ;;  %v3345_v20 = vld [vmem:[%s5086_s3 + $0x270] sm:$0xff]  ;;  %v3380_v22 = vld [vmem:[%s5086_s3 + $0x2e8] sm:$0xff] }
 0x6bf   : > { %3822 = vmatprep.subr.mxu0 %v2252_v15  ;;  %v2251_v39 = vmul.f32 %v4004_v21, %v2247_v18  ;;  %v2249_v48 = vmul.f32 %v4008_v45, %v2245_v19  ;;  %v3376_v18 = vld [vmem:[%s5086_s3 + $0x2c8] sm:$0xff]  ;;  %v3377_v21 = vld [vmem:[%s5086_s3 + $0x2d0] sm:$0xff]  ;;  %v3378_v19 = vld [vmem:[%s5086_s3 + $0x2d8] sm:$0xff] }
 0x6c0   : > { %3823 = vmatpush3.msra.mxu0 %v2252_v15  ;;  %v3344_v15 = vld [vmem:[%s5086_s3 + $0x268] sm:$0xff]  ;;  %v3382_v45 = vld [vmem:[%s5086_s3 + $0x2f8] sm:$0xff] }
 0x6c1   : > { %3824 = vmatprep.subr.mxu0 %v2251_v39 }
 0x6c2   : > { %3825 = vmatpush3.msra.mxu0 %v2251_v39  ;;  %v3346_v39 = vld [vmem:[%s5086_s3 + $0x278] sm:$0xff] }
 0x6c3   : > { %3826 = vmatprep.subr.mxu0 %v2250_v43 }
 0x6c4   : > { %3827 = vmatpush3.msra.mxu0 %v2250_v43  ;;  %v3381_v43 = vld [vmem:[%s5086_s3 + $0x2f0] sm:$0xff] }
 0x6c5   : > { %3828 = vmatprep.subr.mxu0 %v2249_v48 }
 0x6c6   : > { %3829 = vmatpush3.msra.mxu0 %v2249_v48  ;;  %v3403_v48 = vld [vmem:[%s5088_s5 + $0x60] sm:$0xff] }
 0x6c7   : > { %3831 = vmatmul.mubr.msk.f32.vlgmr.msra.gmra.mxu0 %vm450_vm1, %v3328_v23 }
 0x6c8   : > { %3833 = vmatprep.mubr.msk.f32.mxu0 %vm450_vm1, %v3329_v25 }
 0x6cb   : > { %3834 = vmatmul.mubr.msk.f32.gmra.mxu0 %vm450_vm1, %v3330_v26 }
 0x6cc   : > { %3844 = vmatprep.mubr.msk.f32.mxu0 %vm450_vm1, %v3347_v27 }
 0x787   : > { %v3832_v31 = vpop.f32.mrf.mxu0 }
 0x788   : > { %v2367_v35 = vadd.f32 %v3832_v31, %v2271_v30 }
 0x789   : > { %v2361_v37 = vpop.f32.mrf.mxu0 }
 0x78a   : > { %v2362_v40 = vadd.f32 %v2361_v37, %v2266_v36  ;;  %2387 = vrot.lane.b32.xlu1 %v2367_v35, %s4094_s18  ;;  %v4841_v32 = vadd.f32 %v2367_v35, %v4643_v12 }
 0x78b   : > { %v3835_v38 = vpop.f32.mrf.mxu0 }
 0x78c   : > { %v2377_v42 = vadd.f32 %v3835_v38, %v2281_v28  ;;  %v4844_v33 = vadd.f32 %v2362_v40, %v4647_v17  ;;  %v3348_v17 = vld [vmem:[%s5086_s3 + $0x288] sm:$0xff] }
 0x78d   : > { %v2371_v41 = vpop.f32.mrf.mxu0 }
 0x78e   : > { %v2372_v44 = vadd.f32 %v2371_v41, %v2276_v29  ;;  %2391 = vrot.lane.b32.xlu0 %v2377_v42, %s4094_s18  ;;  %3836 = vmatprep.subr.mxu0 %v2377_v42  ;;  %v4848_v47 = vadd.f32 %v2377_v42, %v4651_v16  ;;  %v3349_v16 = vld [vmem:[%s5086_s3 + $0x290] sm:$0xff] }
 0x78f   : > { %3837 = vmatpush3.msra.mxu0 %v2377_v42 }
 0x790   : > { %2389 = vrot.lane.b32.xlu1 %v2372_v44, %s4094_s18  ;;  %3838 = vmatprep.subr.mxu0 %v2372_v44  ;;  %v4852_v12 = vadd.f32 %v2372_v44, %v4655_v24  ;;  %v3350_v24 = vld [vmem:[%s5086_s3 + $0x298] sm:$0xff] }
 0x791   : > { %3839 = vmatpush3.msra.mxu0 %v2372_v44 }
 0x792   : > { %2404 = vrot.lane.b32.xlu0 %v2377_v42, %s4095_s19  ;;  %3840 = vmatprep.subr.mxu0 %v2367_v35 }
 0x793   : > { %3841 = vmatpush3.msra.mxu0 %v2367_v35 }
 0x794   : > { %2385 = vrot.lane.b32.xlu1 %v2362_v40, %s4094_s18  ;;  %3842 = vmatprep.subr.mxu0 %v2362_v40 }
 0x795   : > { %3843 = vmatpush3.msra.mxu0 %v2362_v40 }
 0x796   : > { %2402 = vrot.lane.b32.xlu0 %v2372_v44, %s4095_s19  ;;  %3845 = vmatmul.mubr.msk.f32.vlgmr.msra.gmra.mxu0 %vm450_vm1, %v3348_v17 }
 0x797   : > { %3847 = vmatprep.mubr.msk.f32.mxu0 %vm450_vm1, %v3349_v16 }
 0x798   : > { %2398 = vrot.lane.b32.xlu1 %v2362_v40, %s4095_s19 }
 0x79a   : > { %2400 = vrot.lane.b32.xlu0 %v2367_v35, %s4095_s19  ;;  %3848 = vmatmul.mubr.msk.f32.gmra.mxu0 %vm450_vm1, %v3350_v24  ;;  %s5040_s19 = scalar_lea.hbm %s5090_s7, %s3421_s9 }
 0x79b   : > { %3850 = vmatprep.mubr.msk.f32.mxu0 %vm450_vm1, %v3351_v49 }
 0x79c   : > { %2873 = vperm.xlu1 %3960, %v3401_v50  }
 0x79e   : > { %2878 = vperm.xlu0 %3959, %v3402_v51   ;;  %3851 = vmatmul.mubr.msk.f32.gmra.mxu0 %vm450_vm1, %v3352_v52 }
 0x79f   : > { %3853 = vmatprep.mubr.msk.f32.mxu0 %vm450_vm1, %v3353_v53 }
 0x7a0   : > { %2858 = vperm.xlu1 %3960, %v3398_v54  }
 0x7a2   : > { %2868 = vperm.xlu0 %3959, %v3400_v55   ;;  %3854 = vmatmul.mubr.msk.f32.gmra.mxu0 %vm450_vm1, %v3354_v56 }
 0x7a3   : > { %3884 = vmatprep.mubr.msk.f32.mxu0 %vm450_vm1, %v3375_v57 }
 0x7a4   : > { %2853 = vperm.xlu1 %3960, %v3397_v58  }
 0x7a6   : > { %2863 = vperm.xlu0 %3959, %v3399_v59  }
 0x7a8   : > { %2843 = vperm.xlu1 %3960, %v3395_v60  }
 0x7aa   : > { %2848 = vperm.xlu0 %3959, %v3396_v61  }
 0x7ac   : > { %2930 = vperm.xlu1 %3960, %v3408_v62  }
 0x7ae   : > { %2925 = vperm.xlu0 %3959, %v3407_v63  }
 0x7b0   : > { %2940 = vperm.xlu1 %3960, %v3410_v0  }
 0x7b2   : > { %2935 = vperm.xlu0 %3959, %v3409_v1  }
 0x7fc   : > { %v2388_v2 = vpop.permute.xlu1 %2387 }
 0x800   : > { %v2392_v5 = vpop.permute.xlu0 %2391 }
 0x801   : > { %3856 = vmatprep.subr.msk.mxu1 %vm2384_vm8, %v2392_v5 }
 0x802   : > { %3857 = vmatpush3.msk.msra.mxu1 %vm2384_vm8, %v2392_v5  ;;  %v2390_v3 = vpop.permute.xlu1 %2389 }
 0x803   : > { %3858 = vmatprep.subr.msk.mxu1 %vm2384_vm8, %v2390_v3 }
 0x804   : > { %v2405_v8 = vpop.permute.xlu0 %2404  ;;  %3859 = vmatpush3.msk.msra.mxu1 %vm2384_vm8, %v2390_v3 }
 0x805   : > { %3860 = vmatprep.subr.msk.mxu1 %vm2384_vm8, %v2388_v2  ;;  %3876 = vmatprep.subr.msk.mxu0 %vm2397_vm9, %v2405_v8 }
 0x806   : > { %3861 = vmatpush3.msk.msra.mxu1 %vm2384_vm8, %v2388_v2  ;;  %v2386_v6 = vpop.permute.xlu1 %2385  ;;  %3877 = vmatpush3.msk.msra.mxu0 %vm2397_vm9, %v2405_v8 }
 0x807   : > { %3862 = vmatprep.subr.msk.mxu1 %vm2384_vm8, %v2386_v6 }
 0x808   : > { %v2403_v10 = vpop.permute.xlu0 %2402  ;;  %3863 = vmatpush3.msk.msra.mxu1 %vm2384_vm8, %v2386_v6 }
 0x809   : > { %3865 = vmatmul.mubr.msk.f32.vlgmr.msra.gmra.mxu1 %vm450_vm1, %v3340_v4  ;;  %3878 = vmatprep.subr.msk.mxu0 %vm2397_vm9, %v2403_v10 }
 0x80a   : > { %3879 = vmatpush3.msk.msra.mxu0 %vm2397_vm9, %v2403_v10  ;;  %3867 = vmatprep.mubr.msk.f32.mxu1 %vm450_vm1, %v3341_v9  ;;  %v2399_v14 = vpop.permute.xlu1 %2398 }
 0x80c   : > { %v2401_v13 = vpop.permute.xlu0 %2400 }
 0x80d   : > { %3868 = vmatmul.mubr.msk.f32.gmra.mxu1 %vm450_vm1, %v3342_v7  ;;  %3880 = vmatprep.subr.msk.mxu0 %vm2397_vm9, %v2401_v13 }
 0x80e   : > { %3881 = vmatpush3.msk.msra.mxu0 %vm2397_vm9, %v2401_v13  ;;  %3870 = vmatprep.mubr.msk.f32.mxu1 %vm450_vm1, %v3343_v11 }
 0x80f   : > { %3882 = vmatprep.subr.msk.mxu0 %vm2397_vm9, %v2399_v14 }
 0x810   : > { %3883 = vmatpush3.msk.msra.mxu0 %vm2397_vm9, %v2399_v14 }
 0x811   : > { %3871 = vmatmul.mubr.msk.f32.gmra.mxu1 %vm450_vm1, %v3344_v15  ;;  %3885 = vmatmul.mubr.msk.f32.vlgmr.msra.gmra.mxu0 %vm450_vm1, %v3376_v18 }
 0x812   : > { %3873 = vmatprep.mubr.msk.f32.mxu1 %vm450_vm1, %v3345_v20  ;;  %3887 = vmatprep.mubr.msk.f32.mxu0 %vm450_vm1, %v3377_v21 }
 0x815   : > { %3874 = vmatmul.mubr.msk.f32.gmra.mxu1 %vm450_vm1, %v3346_v39  ;;  %3888 = vmatmul.mubr.msk.f32.gmra.mxu0 %vm450_vm1, %v3378_v19 }
 0x816   : > { %3890 = vmatprep.mubr.msk.f32.mxu0 %vm450_vm1, %v3379_v46  ;;  %3904 = vmatprep.mubr.msk.f32.mxu1 %vm450_vm1, %v3403_v48 }
 0x817   : > { %v2874_v16 = vpop.permute.xlu1 %2873 }
 0x819   : > { %3891 = vmatmul.mubr.msk.f32.gmra.mxu0 %vm450_vm1, %v3380_v22  ;;  %v2879_v40 = vpop.permute.xlu0 %2878 }
 0x81a   : > { %3893 = vmatprep.mubr.msk.f32.mxu0 %vm450_vm1, %v3381_v43 }
 0x81b   : > { %v2859_v57 = vpop.permute.xlu1 %2858 }
 0x81d   : > { %3894 = vmatmul.mubr.msk.f32.gmra.mxu0 %vm450_vm1, %v3382_v45  ;;  %v2869_v24 = vpop.permute.xlu0 %2868 }
 0x81f   : > { %v2854_v15 = vpop.permute.xlu1 %2853 }
 0x821   : > { %v2864_v61 = vpop.permute.xlu0 %2863 }
 0x823   : > { %v2844_v45 = vpop.permute.xlu1 %2843 }
 0x825   : > { %v2849_v22 = vpop.permute.xlu0 %2848 }
 0x856   : > { %v3846_v23 = vpop.f32.mrf.mxu0 }
 0x858   : > { %v2518_v25 = vpop.f32.mrf.mxu0 }
 0x85a   : > { %v3849_v26 = vpop.f32.mrf.mxu0 }
 0x85c   : > { %v2528_v27 = vpop.f32.mrf.mxu0 }
 0x85e   : > { %v3852_v28 = vpop.f32.mrf.mxu0 }
 0x860   : > { %v2538_v29 = vpop.f32.mrf.mxu0 }
 0x862   : > { %v3855_v31 = vpop.f32.mrf.mxu0 }
 0x864   : > { %v2548_v36 = vpop.f32.mrf.mxu0 }
 0x8c9   : > { %v3866_v30 = vpop.f32.mrf.mxu1 }
 0x8ca   : > { %v2653_v7 = vadd.f32 %v3866_v30, %v3846_v23 }
 0x8cb   : > { %v2647_v34 = vpop.f32.mrf.mxu1 }
 0x8cc   : > { %v2648_v18 = vadd.f32 %v2647_v34, %v2518_v25 }
 0x8cd   : > { %v3869_v35 = vpop.f32.mrf.mxu1 }
 0x8ce   : > { %v2663_v62 = vadd.f32 %v3869_v35, %v3849_v26 }
 0x8cf   : > { %v2657_v37 = vpop.f32.mrf.mxu1 }
 0x8d0   : > { %v2658_v3 = vadd.f32 %v2657_v37, %v2528_v27 }
 0x8d1   : > { %v3872_v38 = vpop.f32.mrf.mxu1  ;;  %v3886_v42 = vpop.f32.mrf.mxu0 }
 0x8d2   : > { %v2673_v51 = vadd.f32 %v3872_v38, %v3852_v28  ;;  %v2825_v20 = vadd.f32 %v3886_v42, %v2653_v7 }
 0x8d3   : > { %v2667_v41 = vpop.f32.mrf.mxu1  ;;  %v2785_v44 = vpop.f32.mrf.mxu0 }
 0x8d4   : > { %v2668_v53 = vadd.f32 %v2667_v41, %v2538_v29  ;;  %v2824_v19 = vadd.f32 %v2785_v44, %v2648_v18  ;;  %v2882_v43 = vadd.f32 %v2849_v22, %v2825_v20 }
 0x8d5   : > { %v3889_v17 = vpop.f32.mrf.mxu0  ;;  %v3875_v49 = vpop.f32.mrf.mxu1 }
 0x8d6   : > { %v2683_v58 = vadd.f32 %v3875_v49, %v3855_v31  ;;  %v2827_v6 = vadd.f32 %v3889_v17, %v2663_v62  ;;  %v2881_v48 = vadd.f32 %v2844_v45, %v2824_v19  ;;  %v3404_v49 = vld [vmem:[%s5088_s5 + $0x68] sm:$0xff] }
 0x8d7   : > { %v2795_v50 = vpop.f32.mrf.mxu0  ;;  %v2677_v55 = vpop.f32.mrf.mxu1 }
 0x8d8   : > { %v2678_v0 = vadd.f32 %v2677_v55, %v2548_v36  ;;  %v2826_v11 = vadd.f32 %v2795_v50, %v2658_v3  ;;  %v2884_v21 = vadd.f32 %v2859_v57, %v2827_v6  ;;  %v3405_v50 = vld [vmem:[%s5088_s5 + $0x70] sm:$0xff] }
 0x8d9   : > { %v3892_v52 = vpop.f32.mrf.mxu0 }
 0x8da   : > { %v2829_v54 = vadd.f32 %v3892_v52, %v2673_v51  ;;  %v2883_v46 = vadd.f32 %v2854_v15, %v2826_v11  ;;  %v3406_v51 = vld [vmem:[%s5088_s5 + $0x78] sm:$0xff]  ;;  %v2931_v52 = vpop.permute.xlu1 %2930 }
 0x8db   : > { %v2805_v56 = vpop.f32.mrf.mxu0 }
 0x8dc   : > { %v2886_v59 = vadd.f32 %v2869_v24, %v2829_v54  ;;  %v2828_v60 = vadd.f32 %v2805_v56, %v2668_v53  ;;  %v2926_v53 = vpop.permute.xlu0 %2925 }
 0x8dd   : > { %v3895_v63 = vpop.f32.mrf.mxu0 }
 0x8de   : > { %v2894_v1 = vmul.f32 0.5, %v2886_v59  ;;  %v2885_v2 = vadd.f32 %v2864_v61, %v2828_v60  ;;  %v2831_v5 = vadd.f32 %v3895_v63, %v2683_v58  ;;  %v2941_v59 = vpop.permute.xlu1 %2940 }
 0x8df   : > { %v2815_v8 = vpop.f32.mrf.mxu0 }
 0x8e0   : > { %v2893_v4 = vmul.f32 0.5, %v2885_v2  ;;  %v2888_v9 = vadd.f32 %v2879_v40, %v2831_v5  ;;  %v2830_v10 = vadd.f32 %v2815_v8, %v2678_v0  ;;  %4009 = vtanh.f32 %v2894_v1  ;;  %v2936_v63 = vpop.permute.xlu0 %2935 }
 0x8e2   : > { %v2896_v13 = vmul.f32 0.5, %v2888_v9  ;;  %v2887_v14 = vadd.f32 %v2874_v16, %v2830_v10  ;;  %4011 = vtanh.f32 %v2893_v4 }
 0x8e4   : > { %4013 = vtanh.f32 %v2896_v13  ;;  %v2895_v39 = vmul.f32 0.5, %v2887_v14 }
 0x8e6   : > { %4015 = vtanh.f32 %v2895_v39 }
 0x8e7   : > { %4017 = vtanh.f32 %v2884_v21 }
 0x8e8   : > { %4019 = vtanh.f32 %v2883_v46 }
 0x8e9   : > { %4021 = vtanh.f32 %v2882_v43 }
 0x8ea   : > { %4023 = vtanh.f32 %v2881_v48 }
 0x8ed   : > { %v4010_v23 = vpop.eup %4009 }
 0x8ee   : > { %v2902_v28 = vadd.f32 1.0, %v4010_v23 }
 0x8ef   : > { %v4012_v26 = vpop.eup %4011 }
 0x8f0   : > { %v2901_v34 = vadd.f32 1.0, %v4012_v26  ;;  %v2906_v40 = vmul.f32 0.5, %v2902_v28 }
 0x8f1   : > { %v4014_v27 = vpop.eup %4013 }
 0x8f2   : > { %v2904_v25 = vadd.f32 1.0, %v4014_v27  ;;  %v2905_v41 = vmul.f32 0.5, %v2901_v34 }
 0x8f3   : > { %v4016_v29 = vpop.eup %4015 }
 0x8f4   : > { %v2908_v30 = vmul.f32 0.5, %v2904_v25  ;;  %v2903_v31 = vadd.f32 1.0, %v4016_v29  ;;  %v4018_v35 = vpop.eup %4017 }
 0x8f5   : > { %v4020_v38 = vpop.eup %4019 }
 0x8f6   : > { %v2912_v36 = vmul.f32 %v4018_v35, %v2908_v30  ;;  %v2907_v37 = vmul.f32 0.5, %v2903_v31  ;;  %v4022_v44 = vpop.eup %4021 }
 0x8f7   : > { %v2910_v17 = vmul.f32 %v4022_v44, %v2906_v40  ;;  %v4024_v16 = vpop.eup %4023 }
 0x8f8   : > { %3896 = vmatprep.subr.mxu1 %v2912_v36  ;;  %v2911_v42 = vmul.f32 %v4020_v38, %v2907_v37  ;;  %v2909_v24 = vmul.f32 %v4024_v16, %v2905_v41 }
 0x8f9   : > { %3897 = vmatpush3.msra.mxu1 %v2912_v36 }
 0x8fa   : > { %3898 = vmatprep.subr.mxu1 %v2911_v42 }
 0x8fb   : > { %3899 = vmatpush3.msra.mxu1 %v2911_v42 }
 0x8fc   : > { %3900 = vmatprep.subr.mxu1 %v2910_v17 }
 0x8fd   : > { %3901 = vmatpush3.msra.mxu1 %v2910_v17 }
 0x8fe   : > { %3902 = vmatprep.subr.mxu1 %v2909_v24 }
 0x8ff   : > { %3903 = vmatpush3.msra.mxu1 %v2909_v24 }
 0x900   : > { %3905 = vmatmul.mubr.msk.f32.vlgmr.msra.gmra.mxu1 %vm450_vm1, %v3404_v49 }
 0x901   : > { %3907 = vmatprep.mubr.msk.f32.mxu1 %vm450_vm1, %v3405_v50 }
 0x904   : > { %3908 = vmatmul.mubr.msk.f32.gmra.mxu1 %vm450_vm1, %v3406_v51 }
 0x9c0   : > { %v3906_v54 = vpop.f32.mrf.mxu1 }
 0x9c1   : > { %v3027_v55 = vadd.f32 %v3906_v54, %v2931_v52 }
 0x9c2   : > { %v3021_v56 = vpop.f32.mrf.mxu1 }
 0x9c3   : > { %v3041_v57 = vadd.f32 %v3027_v55, %v4841_v32  ;;  %v3022_v58 = vadd.f32 %v3021_v56, %v2926_v53 }
 0x9c4   : > { %v3909_v60 = vpop.f32.mrf.mxu1 }
 0x9c5   : > { %3045 = vst [vmem:[%s271_s22 + $0x8] sm:$0xff] %v3041_v57  ;;  %v3040_v61 = vadd.f32 %v3022_v58, %v4844_v33  ;;  %v3037_v62 = vadd.f32 %v3909_v60, %v2941_v59 }
 0x9c6   : > { %v3031_v0 = vpop.f32.mrf.mxu1 }
 0x9c7   : > { %3044 = vst [vmem:[%s271_s22] sm:$0xff] %v3040_v61  ;;  %v3043_v1 = vadd.f32 %v3037_v62, %v4848_v47  ;;  %v3032_v2 = vadd.f32 %v3031_v0, %v2936_v63 }
 0x9c9   : > { %3047 = vst [vmem:[%s271_s22 + $0x18] sm:$0xff] %v3043_v1  ;;  %v3042_v32 = vadd.f32 %v3032_v2, %v4852_v12 }
 0x9cb   : > { %3046 = vst [vmem:[%s271_s22 + $0x10] sm:$0xff] %v3042_v32 }
 0x9cc   : > { %4038 = shalt.err (!%p4035_p3)
}
 0x9cd   : > { %s4039_s8 = scalar_lea.hbm %s5040_s19, 512  ;;  %s4043_s22 = scalar_lea.hbm %s5090_s7, 1024 }
 0x9ce   : > { %p4040_p4 = scmp.ne.s32.totalorder %s5040_s19, %s4039_s8  ;;  %p4044_p9 = scmp.lt.s32.totalorder %s5040_s19, %s5090_s7 }
 0x9cf   : > { %p4045_p10 = scmp.lt.s32.totalorder %s4043_s22, %s4039_s8 }
 0x9d0   : > { %p4041_p7 = pnand %p4040_p4, %p4176_p5 }
 0x9d1   : > { %p4046_p11 = por %p4045_p10, %p4044_p9 }
 0x9d2   : > { %p4042_p8 = pneg %p4041_p7 }
 0x9d4   : > { %p4047_p12 = pnand %p4046_p11, %p4042_p8 }
 0x9d6   : > { %4050 = shalt.err (!%p4047_p12)
}
 0x9d7   : > { %s4097_s14 = smov 128  }
 0x9d8   : > { %3910 = dma.vmem_to_hbm [thread:$0]  (%p4176_p5), %s5034_s29, 512, %s5040_s19, %s5042_s21, %s4097_s14, %s4097_s14, %s4094_s18  }
 0x9d9 PF: > { %p3916_p13 = scmp.ge.s32.totalorder %s4085_s27, 2  ;;  %s3077_s28 = sand.u32 1, %s4073_s24  }
 0x9da   : > { %s3078_s15 = scalar_lea.sflag [#allocation3], %s3077_s28 }
 0x9db   : > { %p3913_p0 = pnand %p3916_p13, %p4180_p6 }
 0x9dd   : > { %p3914_p1 = pneg %p3913_p0 }
 0x9df   : > { %4068 = dma.done.wait (%p3914_p1), %s3078_s15, 512  }
 0x9e0   : > { %4070 = vsyncadd (%p3914_p1), %s3078_s15, 4294966784  ;;  %p17_p2 = scmp.ge.s32.totalorder %s4163_s30, 4   ;;  %s5093_s24 = smov %s4077_s25 }
 0x9e1   : > { %s5094_s25 = smov %s4081_s26  ;;  %s5095_s26 = smov %s4174_s10 }
 0x9e2   : > { %s5096_s27 = smov %s4163_s30  ;;  %19 = sbr.rel (!%p17_p2) target bundleno = 3 (0x3), region = 103 }
 0x9e7   :  { %3083 = vsyncpa [#allocation3], 1 }
 0x9e8   :  { %3085 = vsyncpa [#allocation3 + $0x1], 1 }

</bundles_post_ra>
